<compile_context>
chip_gen: v7x
topology: tpu7x:2x2x1
jax: 0.10.0
libtpu: 0.0.40
codegen_flags: <defaults>
</compile_context>

<pallas_src>
import functools

import jax
import jax.numpy as jnp
from jax import lax
from jax.experimental import pallas as pl
from jax.experimental.pallas import tpu as pltpu

EPS = 1e-6


def _pool_kernel(feat_ref, yx_ref, out_ref, *, cyc_r, layer_norm):
    """One block = TN samples on the lane axis.

    Row loop over H: per image row h, compute the W-axis layer-norm statistics,
    the factorized circular-mask row (dx^2 < r^2 - dy^2), and accumulate
    fg_sum / total_sum / fg_cnt into (1, TN) lane-parallel accumulators.
    """
    H, W, TN = feat_ref.shape
    r2 = cyc_r * cyc_r

    y = yx_ref[0:1, :]                                      # (1, TN) int32
    x = yx_ref[1:2, :]                                      # (1, TN) int32

    # Hoisted once per block: squared column distance, shared by every row.
    cols = lax.broadcasted_iota(jnp.int32, (W, TN), 0)      # (W, TN)
    dx = cols - x
    dx2 = dx * dx                                           # (W, TN) int32

    zero = jnp.zeros((1, TN), jnp.float32)

    def row_body(h, carry):
        fg_sum, tot_sum, fg_cnt = carry
        f = feat_ref[h].astype(jnp.float32)                 # (W, TN), cast per row
        if layer_norm:
            # NOTE: torch's mean(-1, True).mean(-1, True) reduces W only (the
            # second mean is a no-op on the kept singleton) -> row-wise LN.
            mu = jnp.mean(f, axis=0, keepdims=True)         # (1, TN)   XLU reduce
            d = f - mu
            var = jnp.mean(d * d, axis=0, keepdims=True)    # (1, TN)   XLU reduce
            inv = pl.reciprocal(jnp.sqrt(var + EPS) + EPS, approx=False)  # EUP
        else:
            d = f
            inv = 1.0

        # getCycle(r): strict "distance < r" disk; pasteImg clipping == the disk
        # restricted to the image, which iterating only valid rows/cols gives.
        dy = h - y                                          # (1, TN) int32
        lim = r2 - dy * dy                                  # (1, TN) int32
        mask = dx2 < lim                                    # (W, TN) bool, 1 op/elem

        row_fg = jnp.sum(jnp.where(mask, d, 0.0), axis=0, keepdims=True)   # XLU
        row_tot = jnp.sum(d, axis=0, keepdims=True)                        # XLU
        row_cnt = jnp.sum(jnp.where(mask, 1.0, 0.0), axis=0, keepdims=True)

        # sum_mask((f - mu) * inv) == inv * sum_mask(f - mu): fold the
        # normalization into the small (1, TN) accumulators.
        fg_sum = fg_sum + inv * row_fg
        tot_sum = tot_sum + inv * row_tot
        fg_cnt = fg_cnt + row_cnt
        return fg_sum, tot_sum, fg_cnt

    fg_sum, tot_sum, fg_cnt = lax.fori_loop(
        0, H, row_body, (zero, zero, zero), unroll=(H <= 32))

    bg_cnt = float(H * W) - fg_cnt                          # bg_mask = 1 - fg_mask
    fg_avg = fg_sum * pl.reciprocal(fg_cnt + EPS, approx=False)             # EUP
    bg_avg = (tot_sum - fg_sum) * pl.reciprocal(bg_cnt + EPS, approx=False)

    out_ref[0:1, :] = fg_avg                                # lane-dense (2, TN) block
    out_ref[1:2, :] = bg_avg


def _choose_tn(n, h, w, itemsize):
    """Lane-block size: multiple of 128; double-buffered feats block under
    ~16 MiB (fits v7x's 64 MiB VMEM with headroom); >= 2 grid blocks whenever
    the sample count allows it (both v7x TensorCores get work); otherwise as
    large as possible (DMA efficiency / fewer grid steps on v5e/v6e)."""
    tn = 128
    budget = 16 * 1024 * 1024
    while tn < 512 and n > 2 * tn and 2 * h * w * (2 * tn) * itemsize <= budget:
        tn *= 2
    return tn


def spatial_softmax_loss(feats, xyens, *, cyc_r=7, temper=1.0, layer_norm=True, tn=None):
    """Pallas implementation of SpatialSoftmax.forward (default config).

    feats: (B, C, H, W); xyens: (B, C, 3) with columns [x, y, exist].
    Returns a scalar float32 loss.
    """
    shape = feats.shape
    H, W = shape[-2], shape[-1]
    feats_flat = feats.reshape(-1, H, W)       # keep native dtype; cast in-kernel
    N = feats_flat.shape[0]
    if tn is None:
        tn = _choose_tn(N, H, W, jnp.dtype(feats.dtype).itemsize)
    assert tn % 128 == 0
    n_pad = ((N + tn - 1) // tn) * tn

    xy = xyens.reshape(-1, 3)
    ys = xy[:, 1].astype(jnp.int32)
    xs = xy[:, 0].astype(jnp.int32)
    exist = xy[:, 2].astype(jnp.float32)

    if n_pad != N:
        feats_flat = jnp.pad(feats_flat, ((0, n_pad - N), (0, 0), (0, 0)))
        ys = jnp.pad(ys, (0, n_pad - N))
        xs = jnp.pad(xs, (0, n_pad - N))
    feats_t = jnp.transpose(feats_flat, (1, 2, 0))            # (H, W, n_pad): samples on lanes
    yx = jnp.stack([ys, xs], axis=0)                          # (2, n_pad) int32

    pooled = pl.pallas_call(
        functools.partial(_pool_kernel, cyc_r=cyc_r, layer_norm=layer_norm),
        out_shape=jax.ShapeDtypeStruct((2, n_pad), jnp.float32),  # rows: [fg; bg]
        grid=(n_pad // tn,),
        in_specs=[
            pl.BlockSpec((H, W, tn), lambda i: (0, 0, i)),
            pl.BlockSpec((2, tn), lambda i: (0, i)),
        ],
        out_specs=pl.BlockSpec((2, tn), lambda i: (0, i)),
        compiler_params=pltpu.CompilerParams(
            dimension_semantics=("parallel",),
            vmem_limit_bytes=32 * 1024 * 1024,
        ),
    )(feats_t, yx)

    # softmaxFgBgSubMax + masked mean of -log(prob): tiny O(N) epilogue in jnp.
    # Padded lanes are sliced off with [:N] BEFORE the global max (must hold).
    fg = pooled[0, :N] * temper
    bg = pooled[1, :N] * temper
    maxx = jnp.maximum(jnp.max(fg), jnp.max(bg))   # global max over all samples (matches torch)
    fge = jnp.exp(fg - maxx)
    bge = jnp.exp(bg - maxx)
    prob = fge / (fge + bge + EPS)
    losses = -jnp.log(prob + EPS)
    return jnp.sum(losses * exist) / (jnp.sum(exist) + EPS)


def reference_loss(feats, xyens, *, cyc_r=7, temper=1.0, layer_norm=True):
    """Pure-JAX mirror of the PyTorch forward (default config), for verification."""
    H, W = feats.shape[-2], feats.shape[-1]
    f = feats.astype(jnp.float32)
    if layer_norm:
        mean = jnp.mean(f, axis=-1, keepdims=True)
        d = f - mean
        var = jnp.mean(d * d, axis=-1, keepdims=True)
        f = d / (jnp.sqrt(var + EPS) + EPS)
    f = f.reshape(-1, H, W)
    xy = xyens.reshape(-1, 3)
    ys = xy[:, 1].astype(jnp.int32)
    xs = xy[:, 0].astype(jnp.int32)
    ex = xy[:, 2].astype(jnp.float32)
    rows = jnp.arange(H)[None, :, None]
    cols = jnp.arange(W)[None, None, :]
    dy = rows - ys[:, None, None]
    dx = cols - xs[:, None, None]
    fg_mask = ((dy * dy + dx * dx) < (cyc_r * cyc_r)).astype(jnp.float32)
    bg_mask = 1.0 - fg_mask
    fg_pool = jnp.sum(f * fg_mask, axis=(-2, -1)) / (jnp.sum(fg_mask, axis=(-2, -1)) + EPS)
    bg_pool = jnp.sum(f * bg_mask, axis=(-2, -1)) / (jnp.sum(bg_mask, axis=(-2, -1)) + EPS)
    fgt = fg_pool * temper
    bgt = bg_pool * temper
    maxx = jnp.maximum(jnp.max(fgt), jnp.max(bgt))
    prob = jnp.exp(fgt - maxx) / (jnp.exp(fgt - maxx) + jnp.exp(bgt - maxx) + EPS)
    losses = -jnp.log(prob + EPS)
    return jnp.sum(losses * ex) / (jnp.sum(ex) + EPS)


if __name__ == "__main__":
    key = jax.random.PRNGKey(0)
    k1, k2, k3, k4 = jax.random.split(key, 4)

    B, C, H, W = 2, 4, 16, 16
    feats = jax.random.normal(k1, (B, C, H, W), dtype=jnp.float32)
    xs = jax.random.randint(k2, (B, C), 0, W)
    ys = jax.random.randint(k3, (B, C), 0, H)
    exist = jax.random.bernoulli(k4, 0.75, (B, C)).astype(jnp.float32)
    # xyens columns: [x, y, exist]  (forward uses xyens[..., [1, 0]] as (y, x))
    xyens = jnp.stack([xs.astype(jnp.float32), ys.astype(jnp.float32), exist], axis=-1)

    loss = spatial_softmax_loss(feats, xyens, cyc_r=7, temper=1.0, layer_norm=True)
    loss = jax.block_until_ready(loss)

    ref = jax.block_until_ready(
        reference_loss(feats, xyens, cyc_r=7, temper=1.0, layer_norm=True)
    )
    assert jnp.allclose(loss, ref, rtol=1e-4, atol=1e-4), (float(loss), float(ref))
    print("KERNEL_OK")
</pallas_src>

<mosaic_0001>
module attributes {stable_mosaic.version = 11 : i64} {
  func.func @_pool_kernel(%arg0: i32, %arg1: memref<16x16x128xf32, #tpu.memory_space<vmem>>, %arg2: memref<2x128xi32, #tpu.memory_space<vmem>>, %arg3: memref<2x128xf32, #tpu.memory_space<vmem>>) attributes {dimension_semantics = [#tpu.dimension_semantics<parallel>], iteration_bounds = array<i64: 1>, scalar_prefetch = 0 : i64, scratch_operands = 0 : i64, tpu.core_type = #tpu.core_type<tc>, window_params = [{transform_indices = @transform_0, window_bounds = array<i64: 16, 16, 128>}, {transform_indices = @transform_1, window_bounds = array<i64: 2, 128>}, {transform_indices = @transform_2, window_bounds = array<i64: 2, 128>}]} {
    %c0 = arith.constant 0 : index
    %c0_0 = arith.constant 0 : index
    %0 = vector.load %arg2[%c0, %c0_0] : memref<2x128xi32, #tpu.memory_space<vmem>>, vector<1x128xi32>
    %c1 = arith.constant 1 : index
    %c0_1 = arith.constant 0 : index
    %1 = vector.load %arg2[%c1, %c0_1] : memref<2x128xi32, #tpu.memory_space<vmem>>, vector<1x128xi32>
    %2 = tpu.iota {dimensions = array<i32: 0>} : vector<16x128xi32>
    %3 = vector.broadcast %1 : vector<1x128xi32> to vector<16x128xi32>
    %4 = arith.subi %2, %3 : vector<16x128xi32>
    %5 = arith.muli %4, %4 : vector<16x128xi32>
    %cst = arith.constant 0.000000e+00 : f32
    %6 = vector.broadcast %cst : f32 to vector<1x128xf32>
    %c0_i32 = arith.constant 0 : i32
    %7 = arith.index_cast %c0_i32 : i32 to index
    %c0_2 = arith.constant 0 : index
    %c0_3 = arith.constant 0 : index
    %8 = vector.load %arg1[%7, %c0_2, %c0_3] : memref<16x16x128xf32, #tpu.memory_space<vmem>>, vector<1x16x128xf32>
    %9 = vector.shape_cast %8 : vector<1x16x128xf32> to vector<16x128xf32>
    %cst_4 = arith.constant dense<0.000000e+00> : vector<128xf32>
    %10 = vector.multi_reduction <add>, %9, %cst_4 [0] : vector<16x128xf32> to vector<128xf32>
    %11 = vector.shape_cast %10 : vector<128xf32> to vector<1x128xf32>
    %cst_5 = arith.constant 1.600000e+01 : f32
    %12 = vector.broadcast %cst_5 : f32 to vector<1x128xf32>
    %13 = arith.divf %11, %12 : vector<1x128xf32>
    %14 = vector.broadcast %13 : vector<1x128xf32> to vector<16x128xf32>
    %15 = arith.subf %9, %14 : vector<16x128xf32>
    %16 = arith.mulf %15, %15 : vector<16x128xf32>
    %cst_6 = arith.constant dense<0.000000e+00> : vector<128xf32>
    %17 = vector.multi_reduction <add>, %16, %cst_6 [0] : vector<16x128xf32> to vector<128xf32>
    %18 = vector.shape_cast %17 : vector<128xf32> to vector<1x128xf32>
    %cst_7 = arith.constant 1.600000e+01 : f32
    %19 = vector.broadcast %cst_7 : f32 to vector<1x128xf32>
    %20 = arith.divf %18, %19 : vector<1x128xf32>
    %cst_8 = arith.constant 9.99999997E-7 : f32
    %21 = vector.broadcast %cst_8 : f32 to vector<1x128xf32>
    %22 = arith.addf %20, %21 : vector<1x128xf32>
    %23 = math.sqrt %22 : vector<1x128xf32>
    %cst_9 = arith.constant 9.99999997E-7 : f32
    %24 = vector.broadcast %cst_9 : f32 to vector<1x128xf32>
    %25 = arith.addf %23, %24 : vector<1x128xf32>
    %26 = tpu.reciprocal %25 : vector<1x128xf32> -> vector<1x128xf32>
    %27 = vector.broadcast %c0_i32 : i32 to vector<1x128xi32>
    %28 = arith.subi %27, %0 : vector<1x128xi32>
    %29 = arith.muli %28, %28 : vector<1x128xi32>
    %c49_i32 = arith.constant 49 : i32
    %30 = vector.broadcast %c49_i32 : i32 to vector<1x128xi32>
    %31 = arith.subi %30, %29 : vector<1x128xi32>
    %32 = vector.broadcast %31 : vector<1x128xi32> to vector<16x128xi32>
    %33 = arith.cmpi slt, %5, %32 : vector<16x128xi32>
    %cst_10 = arith.constant 0.000000e+00 : f32
    %34 = vector.broadcast %cst_10 : f32 to vector<16x128xf32>
    %35 = arith.select %33, %15, %34 : vector<16x128xi1>, vector<16x128xf32>
    %cst_11 = arith.constant dense<0.000000e+00> : vector<128xf32>
    %36 = vector.multi_reduction <add>, %35, %cst_11 [0] : vector<16x128xf32> to vector<128xf32>
    %37 = vector.shape_cast %36 : vector<128xf32> to vector<1x128xf32>
    %cst_12 = arith.constant dense<0.000000e+00> : vector<128xf32>
    %38 = vector.multi_reduction <add>, %15, %cst_12 [0] : vector<16x128xf32> to vector<128xf32>
    %39 = vector.shape_cast %38 : vector<128xf32> to vector<1x128xf32>
    %cst_13 = arith.constant 1.000000e+00 : f32
    %cst_14 = arith.constant 0.000000e+00 : f32
    %40 = vector.broadcast %cst_13 : f32 to vector<16x128xf32>
    %41 = vector.broadcast %cst_14 : f32 to vector<16x128xf32>
    %42 = arith.select %33, %40, %41 : vector<16x128xi1>, vector<16x128xf32>
    %cst_15 = arith.constant dense<0.000000e+00> : vector<128xf32>
    %43 = vector.multi_reduction <add>, %42, %cst_15 [0] : vector<16x128xf32> to vector<128xf32>
    %44 = vector.shape_cast %43 : vector<128xf32> to vector<1x128xf32>
    %45 = arith.mulf %26, %37 : vector<1x128xf32>
    %46 = arith.addf %6, %45 : vector<1x128xf32>
    %47 = arith.mulf %26, %39 : vector<1x128xf32>
    %48 = arith.addf %6, %47 : vector<1x128xf32>
    %49 = arith.addf %6, %44 : vector<1x128xf32>
    %c1_i32 = arith.constant 1 : i32
    %50 = arith.index_cast %c1_i32 : i32 to index
    %c0_16 = arith.constant 0 : index
    %c0_17 = arith.constant 0 : index
    %51 = vector.load %arg1[%50, %c0_16, %c0_17] : memref<16x16x128xf32, #tpu.memory_space<vmem>>, vector<1x16x128xf32>
    %52 = vector.shape_cast %51 : vector<1x16x128xf32> to vector<16x128xf32>
    %cst_18 = arith.constant dense<0.000000e+00> : vector<128xf32>
    %53 = vector.multi_reduction <add>, %52, %cst_18 [0] : vector<16x128xf32> to vector<128xf32>
    %54 = vector.shape_cast %53 : vector<128xf32> to vector<1x128xf32>
    %cst_19 = arith.constant 1.600000e+01 : f32
    %55 = vector.broadcast %cst_19 : f32 to vector<1x128xf32>
    %56 = arith.divf %54, %55 : vector<1x128xf32>
    %57 = vector.broadcast %56 : vector<1x128xf32> to vector<16x128xf32>
    %58 = arith.subf %52, %57 : vector<16x128xf32>
    %59 = arith.mulf %58, %58 : vector<16x128xf32>
    %cst_20 = arith.constant dense<0.000000e+00> : vector<128xf32>
    %60 = vector.multi_reduction <add>, %59, %cst_20 [0] : vector<16x128xf32> to vector<128xf32>
    %61 = vector.shape_cast %60 : vector<128xf32> to vector<1x128xf32>
    %cst_21 = arith.constant 1.600000e+01 : f32
    %62 = vector.broadcast %cst_21 : f32 to vector<1x128xf32>
    %63 = arith.divf %61, %62 : vector<1x128xf32>
    %cst_22 = arith.constant 9.99999997E-7 : f32
    %64 = vector.broadcast %cst_22 : f32 to vector<1x128xf32>
    %65 = arith.addf %63, %64 : vector<1x128xf32>
    %66 = math.sqrt %65 : vector<1x128xf32>
    %cst_23 = arith.constant 9.99999997E-7 : f32
    %67 = vector.broadcast %cst_23 : f32 to vector<1x128xf32>
    %68 = arith.addf %66, %67 : vector<1x128xf32>
    %69 = tpu.reciprocal %68 : vector<1x128xf32> -> vector<1x128xf32>
    %70 = vector.broadcast %c1_i32 : i32 to vector<1x128xi32>
    %71 = arith.subi %70, %0 : vector<1x128xi32>
    %72 = arith.muli %71, %71 : vector<1x128xi32>
    %c49_i32_24 = arith.constant 49 : i32
    %73 = vector.broadcast %c49_i32_24 : i32 to vector<1x128xi32>
    %74 = arith.subi %73, %72 : vector<1x128xi32>
    %75 = vector.broadcast %74 : vector<1x128xi32> to vector<16x128xi32>
    %76 = arith.cmpi slt, %5, %75 : vector<16x128xi32>
    %cst_25 = arith.constant 0.000000e+00 : f32
    %77 = vector.broadcast %cst_25 : f32 to vector<16x128xf32>
    %78 = arith.select %76, %58, %77 : vector<16x128xi1>, vector<16x128xf32>
    %cst_26 = arith.constant dense<0.000000e+00> : vector<128xf32>
    %79 = vector.multi_reduction <add>, %78, %cst_26 [0] : vector<16x128xf32> to vector<128xf32>
    %80 = vector.shape_cast %79 : vector<128xf32> to vector<1x128xf32>
    %cst_27 = arith.constant dense<0.000000e+00> : vector<128xf32>
    %81 = vector.multi_reduction <add>, %58, %cst_27 [0] : vector<16x128xf32> to vector<128xf32>
    %82 = vector.shape_cast %81 : vector<128xf32> to vector<1x128xf32>
    %cst_28 = arith.constant 1.000000e+00 : f32
    %cst_29 = arith.constant 0.000000e+00 : f32
    %83 = vector.broadcast %cst_28 : f32 to vector<16x128xf32>
    %84 = vector.broadcast %cst_29 : f32 to vector<16x128xf32>
    %85 = arith.select %76, %83, %84 : vector<16x128xi1>, vector<16x128xf32>
    %cst_30 = arith.constant dense<0.000000e+00> : vector<128xf32>
    %86 = vector.multi_reduction <add>, %85, %cst_30 [0] : vector<16x128xf32> to vector<128xf32>
    %87 = vector.shape_cast %86 : vector<128xf32> to vector<1x128xf32>
    %88 = arith.mulf %69, %80 : vector<1x128xf32>
    %89 = arith.addf %46, %88 : vector<1x128xf32>
    %90 = arith.mulf %69, %82 : vector<1x128xf32>
    %91 = arith.addf %48, %90 : vector<1x128xf32>
    %92 = arith.addf %49, %87 : vector<1x128xf32>
    %c2_i32 = arith.constant 2 : i32
    %93 = arith.index_cast %c2_i32 : i32 to index
    %c0_31 = arith.constant 0 : index
    %c0_32 = arith.constant 0 : index
    %94 = vector.load %arg1[%93, %c0_31, %c0_32] : memref<16x16x128xf32, #tpu.memory_space<vmem>>, vector<1x16x128xf32>
    %95 = vector.shape_cast %94 : vector<1x16x128xf32> to vector<16x128xf32>
    %cst_33 = arith.constant dense<0.000000e+00> : vector<128xf32>
    %96 = vector.multi_reduction <add>, %95, %cst_33 [0] : vector<16x128xf32> to vector<128xf32>
    %97 = vector.shape_cast %96 : vector<128xf32> to vector<1x128xf32>
    %cst_34 = arith.constant 1.600000e+01 : f32
    %98 = vector.broadcast %cst_34 : f32 to vector<1x128xf32>
    %99 = arith.divf %97, %98 : vector<1x128xf32>
    %100 = vector.broadcast %99 : vector<1x128xf32> to vector<16x128xf32>
    %101 = arith.subf %95, %100 : vector<16x128xf32>
    %102 = arith.mulf %101, %101 : vector<16x128xf32>
    %cst_35 = arith.constant dense<0.000000e+00> : vector<128xf32>
    %103 = vector.multi_reduction <add>, %102, %cst_35 [0] : vector<16x128xf32> to vector<128xf32>
    %104 = vector.shape_cast %103 : vector<128xf32> to vector<1x128xf32>
    %cst_36 = arith.constant 1.600000e+01 : f32
    %105 = vector.broadcast %cst_36 : f32 to vector<1x128xf32>
    %106 = arith.divf %104, %105 : vector<1x128xf32>
    %cst_37 = arith.constant 9.99999997E-7 : f32
    %107 = vector.broadcast %cst_37 : f32 to vector<1x128xf32>
    %108 = arith.addf %106, %107 : vector<1x128xf32>
    %109 = math.sqrt %108 : vector<1x128xf32>
    %cst_38 = arith.constant 9.99999997E-7 : f32
    %110 = vector.broadcast %cst_38 : f32 to vector<1x128xf32>
    %111 = arith.addf %109, %110 : vector<1x128xf32>
    %112 = tpu.reciprocal %111 : vector<1x128xf32> -> vector<1x128xf32>
    %113 = vector.broadcast %c2_i32 : i32 to vector<1x128xi32>
    %114 = arith.subi %113, %0 : vector<1x128xi32>
    %115 = arith.muli %114, %114 : vector<1x128xi32>
    %c49_i32_39 = arith.constant 49 : i32
    %116 = vector.broadcast %c49_i32_39 : i32 to vector<1x128xi32>
    %117 = arith.subi %116, %115 : vector<1x128xi32>
    %118 = vector.broadcast %117 : vector<1x128xi32> to vector<16x128xi32>
    %119 = arith.cmpi slt, %5, %118 : vector<16x128xi32>
    %cst_40 = arith.constant 0.000000e+00 : f32
    %120 = vector.broadcast %cst_40 : f32 to vector<16x128xf32>
    %121 = arith.select %119, %101, %120 : vector<16x128xi1>, vector<16x128xf32>
    %cst_41 = arith.constant dense<0.000000e+00> : vector<128xf32>
    %122 = vector.multi_reduction <add>, %121, %cst_41 [0] : vector<16x128xf32> to vector<128xf32>
    %123 = vector.shape_cast %122 : vector<128xf32> to vector<1x128xf32>
    %cst_42 = arith.constant dense<0.000000e+00> : vector<128xf32>
    %124 = vector.multi_reduction <add>, %101, %cst_42 [0] : vector<16x128xf32> to vector<128xf32>
    %125 = vector.shape_cast %124 : vector<128xf32> to vector<1x128xf32>
    %cst_43 = arith.constant 1.000000e+00 : f32
    %cst_44 = arith.constant 0.000000e+00 : f32
    %126 = vector.broadcast %cst_43 : f32 to vector<16x128xf32>
    %127 = vector.broadcast %cst_44 : f32 to vector<16x128xf32>
    %128 = arith.select %119, %126, %127 : vector<16x128xi1>, vector<16x128xf32>
    %cst_45 = arith.constant dense<0.000000e+00> : vector<128xf32>
    %129 = vector.multi_reduction <add>, %128, %cst_45 [0] : vector<16x128xf32> to vector<128xf32>
    %130 = vector.shape_cast %129 : vector<128xf32> to vector<1x128xf32>
    %131 = arith.mulf %112, %123 : vector<1x128xf32>
    %132 = arith.addf %89, %131 : vector<1x128xf32>
    %133 = arith.mulf %112, %125 : vector<1x128xf32>
    %134 = arith.addf %91, %133 : vector<1x128xf32>
    %135 = arith.addf %92, %130 : vector<1x128xf32>
    %c3_i32 = arith.constant 3 : i32
    %136 = arith.index_cast %c3_i32 : i32 to index
    %c0_46 = arith.constant 0 : index
    %c0_47 = arith.constant 0 : index
    %137 = vector.load %arg1[%136, %c0_46, %c0_47] : memref<16x16x128xf32, #tpu.memory_space<vmem>>, vector<1x16x128xf32>
    %138 = vector.shape_cast %137 : vector<1x16x128xf32> to vector<16x128xf32>
    %cst_48 = arith.constant dense<0.000000e+00> : vector<128xf32>
    %139 = vector.multi_reduction <add>, %138, %cst_48 [0] : vector<16x128xf32> to vector<128xf32>
    %140 = vector.shape_cast %139 : vector<128xf32> to vector<1x128xf32>
    %cst_49 = arith.constant 1.600000e+01 : f32
    %141 = vector.broadcast %cst_49 : f32 to vector<1x128xf32>
    %142 = arith.divf %140, %141 : vector<1x128xf32>
    %143 = vector.broadcast %142 : vector<1x128xf32> to vector<16x128xf32>
    %144 = arith.subf %138, %143 : vector<16x128xf32>
    %145 = arith.mulf %144, %144 : vector<16x128xf32>
    %cst_50 = arith.constant dense<0.000000e+00> : vector<128xf32>
    %146 = vector.multi_reduction <add>, %145, %cst_50 [0] : vector<16x128xf32> to vector<128xf32>
    %147 = vector.shape_cast %146 : vector<128xf32> to vector<1x128xf32>
    %cst_51 = arith.constant 1.600000e+01 : f32
    %148 = vector.broadcast %cst_51 : f32 to vector<1x128xf32>
    %149 = arith.divf %147, %148 : vector<1x128xf32>
    %cst_52 = arith.constant 9.99999997E-7 : f32
    %150 = vector.broadcast %cst_52 : f32 to vector<1x128xf32>
    %151 = arith.addf %149, %150 : vector<1x128xf32>
    %152 = math.sqrt %151 : vector<1x128xf32>
    %cst_53 = arith.constant 9.99999997E-7 : f32
    %153 = vector.broadcast %cst_53 : f32 to vector<1x128xf32>
    %154 = arith.addf %152, %153 : vector<1x128xf32>
    %155 = tpu.reciprocal %154 : vector<1x128xf32> -> vector<1x128xf32>
    %156 = vector.broadcast %c3_i32 : i32 to vector<1x128xi32>
    %157 = arith.subi %156, %0 : vector<1x128xi32>
    %158 = arith.muli %157, %157 : vector<1x128xi32>
    %c49_i32_54 = arith.constant 49 : i32
    %159 = vector.broadcast %c49_i32_54 : i32 to vector<1x128xi32>
    %160 = arith.subi %159, %158 : vector<1x128xi32>
    %161 = vector.broadcast %160 : vector<1x128xi32> to vector<16x128xi32>
    %162 = arith.cmpi slt, %5, %161 : vector<16x128xi32>
    %cst_55 = arith.constant 0.000000e+00 : f32
    %163 = vector.broadcast %cst_55 : f32 to vector<16x128xf32>
    %164 = arith.select %162, %144, %163 : vector<16x128xi1>, vector<16x128xf32>
    %cst_56 = arith.constant dense<0.000000e+00> : vector<128xf32>
    %165 = vector.multi_reduction <add>, %164, %cst_56 [0] : vector<16x128xf32> to vector<128xf32>
    %166 = vector.shape_cast %165 : vector<128xf32> to vector<1x128xf32>
    %cst_57 = arith.constant dense<0.000000e+00> : vector<128xf32>
    %167 = vector.multi_reduction <add>, %144, %cst_57 [0] : vector<16x128xf32> to vector<128xf32>
    %168 = vector.shape_cast %167 : vector<128xf32> to vector<1x128xf32>
    %cst_58 = arith.constant 1.000000e+00 : f32
    %cst_59 = arith.constant 0.000000e+00 : f32
    %169 = vector.broadcast %cst_58 : f32 to vector<16x128xf32>
    %170 = vector.broadcast %cst_59 : f32 to vector<16x128xf32>
    %171 = arith.select %162, %169, %170 : vector<16x128xi1>, vector<16x128xf32>
    %cst_60 = arith.constant dense<0.000000e+00> : vector<128xf32>
    %172 = vector.multi_reduction <add>, %171, %cst_60 [0] : vector<16x128xf32> to vector<128xf32>
    %173 = vector.shape_cast %172 : vector<128xf32> to vector<1x128xf32>
    %174 = arith.mulf %155, %166 : vector<1x128xf32>
    %175 = arith.addf %132, %174 : vector<1x128xf32>
    %176 = arith.mulf %155, %168 : vector<1x128xf32>
    %177 = arith.addf %134, %176 : vector<1x128xf32>
    %178 = arith.addf %135, %173 : vector<1x128xf32>
    %c4_i32 = arith.constant 4 : i32
    %179 = arith.index_cast %c4_i32 : i32 to index
    %c0_61 = arith.constant 0 : index
    %c0_62 = arith.constant 0 : index
    %180 = vector.load %arg1[%179, %c0_61, %c0_62] : memref<16x16x128xf32, #tpu.memory_space<vmem>>, vector<1x16x128xf32>
    %181 = vector.shape_cast %180 : vector<1x16x128xf32> to vector<16x128xf32>
    %cst_63 = arith.constant dense<0.000000e+00> : vector<128xf32>
    %182 = vector.multi_reduction <add>, %181, %cst_63 [0] : vector<16x128xf32> to vector<128xf32>
    %183 = vector.shape_cast %182 : vector<128xf32> to vector<1x128xf32>
    %cst_64 = arith.constant 1.600000e+01 : f32
    %184 = vector.broadcast %cst_64 : f32 to vector<1x128xf32>
    %185 = arith.divf %183, %184 : vector<1x128xf32>
    %186 = vector.broadcast %185 : vector<1x128xf32> to vector<16x128xf32>
    %187 = arith.subf %181, %186 : vector<16x128xf32>
    %188 = arith.mulf %187, %187 : vector<16x128xf32>
    %cst_65 = arith.constant dense<0.000000e+00> : vector<128xf32>
    %189 = vector.multi_reduction <add>, %188, %cst_65 [0] : vector<16x128xf32> to vector<128xf32>
    %190 = vector.shape_cast %189 : vector<128xf32> to vector<1x128xf32>
    %cst_66 = arith.constant 1.600000e+01 : f32
    %191 = vector.broadcast %cst_66 : f32 to vector<1x128xf32>
    %192 = arith.divf %190, %191 : vector<1x128xf32>
    %cst_67 = arith.constant 9.99999997E-7 : f32
    %193 = vector.broadcast %cst_67 : f32 to vector<1x128xf32>
    %194 = arith.addf %192, %193 : vector<1x128xf32>
    %195 = math.sqrt %194 : vector<1x128xf32>
    %cst_68 = arith.constant 9.99999997E-7 : f32
    %196 = vector.broadcast %cst_68 : f32 to vector<1x128xf32>
    %197 = arith.addf %195, %196 : vector<1x128xf32>
    %198 = tpu.reciprocal %197 : vector<1x128xf32> -> vector<1x128xf32>
    %199 = vector.broadcast %c4_i32 : i32 to vector<1x128xi32>
    %200 = arith.subi %199, %0 : vector<1x128xi32>
    %201 = arith.muli %200, %200 : vector<1x128xi32>
    %c49_i32_69 = arith.constant 49 : i32
    %202 = vector.broadcast %c49_i32_69 : i32 to vector<1x128xi32>
    %203 = arith.subi %202, %201 : vector<1x128xi32>
    %204 = vector.broadcast %203 : vector<1x128xi32> to vector<16x128xi32>
    %205 = arith.cmpi slt, %5, %204 : vector<16x128xi32>
    %cst_70 = arith.constant 0.000000e+00 : f32
    %206 = vector.broadcast %cst_70 : f32 to vector<16x128xf32>
    %207 = arith.select %205, %187, %206 : vector<16x128xi1>, vector<16x128xf32>
    %cst_71 = arith.constant dense<0.000000e+00> : vector<128xf32>
    %208 = vector.multi_reduction <add>, %207, %cst_71 [0] : vector<16x128xf32> to vector<128xf32>
    %209 = vector.shape_cast %208 : vector<128xf32> to vector<1x128xf32>
    %cst_72 = arith.constant dense<0.000000e+00> : vector<128xf32>
    %210 = vector.multi_reduction <add>, %187, %cst_72 [0] : vector<16x128xf32> to vector<128xf32>
    %211 = vector.shape_cast %210 : vector<128xf32> to vector<1x128xf32>
    %cst_73 = arith.constant 1.000000e+00 : f32
    %cst_74 = arith.constant 0.000000e+00 : f32
    %212 = vector.broadcast %cst_73 : f32 to vector<16x128xf32>
    %213 = vector.broadcast %cst_74 : f32 to vector<16x128xf32>
    %214 = arith.select %205, %212, %213 : vector<16x128xi1>, vector<16x128xf32>
    %cst_75 = arith.constant dense<0.000000e+00> : vector<128xf32>
    %215 = vector.multi_reduction <add>, %214, %cst_75 [0] : vector<16x128xf32> to vector<128xf32>
    %216 = vector.shape_cast %215 : vector<128xf32> to vector<1x128xf32>
    %217 = arith.mulf %198, %209 : vector<1x128xf32>
    %218 = arith.addf %175, %217 : vector<1x128xf32>
    %219 = arith.mulf %198, %211 : vector<1x128xf32>
    %220 = arith.addf %177, %219 : vector<1x128xf32>
    %221 = arith.addf %178, %216 : vector<1x128xf32>
    %c5_i32 = arith.constant 5 : i32
    %222 = arith.index_cast %c5_i32 : i32 to index
    %c0_76 = arith.constant 0 : index
    %c0_77 = arith.constant 0 : index
    %223 = vector.load %arg1[%222, %c0_76, %c0_77] : memref<16x16x128xf32, #tpu.memory_space<vmem>>, vector<1x16x128xf32>
    %224 = vector.shape_cast %223 : vector<1x16x128xf32> to vector<16x128xf32>
    %cst_78 = arith.constant dense<0.000000e+00> : vector<128xf32>
    %225 = vector.multi_reduction <add>, %224, %cst_78 [0] : vector<16x128xf32> to vector<128xf32>
    %226 = vector.shape_cast %225 : vector<128xf32> to vector<1x128xf32>
    %cst_79 = arith.constant 1.600000e+01 : f32
    %227 = vector.broadcast %cst_79 : f32 to vector<1x128xf32>
    %228 = arith.divf %226, %227 : vector<1x128xf32>
    %229 = vector.broadcast %228 : vector<1x128xf32> to vector<16x128xf32>
    %230 = arith.subf %224, %229 : vector<16x128xf32>
    %231 = arith.mulf %230, %230 : vector<16x128xf32>
    %cst_80 = arith.constant dense<0.000000e+00> : vector<128xf32>
    %232 = vector.multi_reduction <add>, %231, %cst_80 [0] : vector<16x128xf32> to vector<128xf32>
    %233 = vector.shape_cast %232 : vector<128xf32> to vector<1x128xf32>
    %cst_81 = arith.constant 1.600000e+01 : f32
    %234 = vector.broadcast %cst_81 : f32 to vector<1x128xf32>
    %235 = arith.divf %233, %234 : vector<1x128xf32>
    %cst_82 = arith.constant 9.99999997E-7 : f32
    %236 = vector.broadcast %cst_82 : f32 to vector<1x128xf32>
    %237 = arith.addf %235, %236 : vector<1x128xf32>
    %238 = math.sqrt %237 : vector<1x128xf32>
    %cst_83 = arith.constant 9.99999997E-7 : f32
    %239 = vector.broadcast %cst_83 : f32 to vector<1x128xf32>
    %240 = arith.addf %238, %239 : vector<1x128xf32>
    %241 = tpu.reciprocal %240 : vector<1x128xf32> -> vector<1x128xf32>
    %242 = vector.broadcast %c5_i32 : i32 to vector<1x128xi32>
    %243 = arith.subi %242, %0 : vector<1x128xi32>
    %244 = arith.muli %243, %243 : vector<1x128xi32>
    %c49_i32_84 = arith.constant 49 : i32
    %245 = vector.broadcast %c49_i32_84 : i32 to vector<1x128xi32>
    %246 = arith.subi %245, %244 : vector<1x128xi32>
    %247 = vector.broadcast %246 : vector<1x128xi32> to vector<16x128xi32>
    %248 = arith.cmpi slt, %5, %247 : vector<16x128xi32>
    %cst_85 = arith.constant 0.000000e+00 : f32
    %249 = vector.broadcast %cst_85 : f32 to vector<16x128xf32>
    %250 = arith.select %248, %230, %249 : vector<16x128xi1>, vector<16x128xf32>
    %cst_86 = arith.constant dense<0.000000e+00> : vector<128xf32>
    %251 = vector.multi_reduction <add>, %250, %cst_86 [0] : vector<16x128xf32> to vector<128xf32>
    %252 = vector.shape_cast %251 : vector<128xf32> to vector<1x128xf32>
    %cst_87 = arith.constant dense<0.000000e+00> : vector<128xf32>
    %253 = vector.multi_reduction <add>, %230, %cst_87 [0] : vector<16x128xf32> to vector<128xf32>
    %254 = vector.shape_cast %253 : vector<128xf32> to vector<1x128xf32>
    %cst_88 = arith.constant 1.000000e+00 : f32
    %cst_89 = arith.constant 0.000000e+00 : f32
    %255 = vector.broadcast %cst_88 : f32 to vector<16x128xf32>
    %256 = vector.broadcast %cst_89 : f32 to vector<16x128xf32>
    %257 = arith.select %248, %255, %256 : vector<16x128xi1>, vector<16x128xf32>
    %cst_90 = arith.constant dense<0.000000e+00> : vector<128xf32>
    %258 = vector.multi_reduction <add>, %257, %cst_90 [0] : vector<16x128xf32> to vector<128xf32>
    %259 = vector.shape_cast %258 : vector<128xf32> to vector<1x128xf32>
    %260 = arith.mulf %241, %252 : vector<1x128xf32>
    %261 = arith.addf %218, %260 : vector<1x128xf32>
    %262 = arith.mulf %241, %254 : vector<1x128xf32>
    %263 = arith.addf %220, %262 : vector<1x128xf32>
    %264 = arith.addf %221, %259 : vector<1x128xf32>
    %c6_i32 = arith.constant 6 : i32
    %265 = arith.index_cast %c6_i32 : i32 to index
    %c0_91 = arith.constant 0 : index
    %c0_92 = arith.constant 0 : index
    %266 = vector.load %arg1[%265, %c0_91, %c0_92] : memref<16x16x128xf32, #tpu.memory_space<vmem>>, vector<1x16x128xf32>
    %267 = vector.shape_cast %266 : vector<1x16x128xf32> to vector<16x128xf32>
    %cst_93 = arith.constant dense<0.000000e+00> : vector<128xf32>
    %268 = vector.multi_reduction <add>, %267, %cst_93 [0] : vector<16x128xf32> to vector<128xf32>
    %269 = vector.shape_cast %268 : vector<128xf32> to vector<1x128xf32>
    %cst_94 = arith.constant 1.600000e+01 : f32
    %270 = vector.broadcast %cst_94 : f32 to vector<1x128xf32>
    %271 = arith.divf %269, %270 : vector<1x128xf32>
    %272 = vector.broadcast %271 : vector<1x128xf32> to vector<16x128xf32>
    %273 = arith.subf %267, %272 : vector<16x128xf32>
    %274 = arith.mulf %273, %273 : vector<16x128xf32>
    %cst_95 = arith.constant dense<0.000000e+00> : vector<128xf32>
    %275 = vector.multi_reduction <add>, %274, %cst_95 [0] : vector<16x128xf32> to vector<128xf32>
    %276 = vector.shape_cast %275 : vector<128xf32> to vector<1x128xf32>
    %cst_96 = arith.constant 1.600000e+01 : f32
    %277 = vector.broadcast %cst_96 : f32 to vector<1x128xf32>
    %278 = arith.divf %276, %277 : vector<1x128xf32>
    %cst_97 = arith.constant 9.99999997E-7 : f32
    %279 = vector.broadcast %cst_97 : f32 to vector<1x128xf32>
    %280 = arith.addf %278, %279 : vector<1x128xf32>
    %281 = math.sqrt %280 : vector<1x128xf32>
    %cst_98 = arith.constant 9.99999997E-7 : f32
    %282 = vector.broadcast %cst_98 : f32 to vector<1x128xf32>
    %283 = arith.addf %281, %282 : vector<1x128xf32>
    %284 = tpu.reciprocal %283 : vector<1x128xf32> -> vector<1x128xf32>
    %285 = vector.broadcast %c6_i32 : i32 to vector<1x128xi32>
    %286 = arith.subi %285, %0 : vector<1x128xi32>
    %287 = arith.muli %286, %286 : vector<1x128xi32>
    %c49_i32_99 = arith.constant 49 : i32
    %288 = vector.broadcast %c49_i32_99 : i32 to vector<1x128xi32>
    %289 = arith.subi %288, %287 : vector<1x128xi32>
    %290 = vector.broadcast %289 : vector<1x128xi32> to vector<16x128xi32>
    %291 = arith.cmpi slt, %5, %290 : vector<16x128xi32>
    %cst_100 = arith.constant 0.000000e+00 : f32
    %292 = vector.broadcast %cst_100 : f32 to vector<16x128xf32>
    %293 = arith.select %291, %273, %292 : vector<16x128xi1>, vector<16x128xf32>
    %cst_101 = arith.constant dense<0.000000e+00> : vector<128xf32>
    %294 = vector.multi_reduction <add>, %293, %cst_101 [0] : vector<16x128xf32> to vector<128xf32>
    %295 = vector.shape_cast %294 : vector<128xf32> to vector<1x128xf32>
    %cst_102 = arith.constant dense<0.000000e+00> : vector<128xf32>
    %296 = vector.multi_reduction <add>, %273, %cst_102 [0] : vector<16x128xf32> to vector<128xf32>
    %297 = vector.shape_cast %296 : vector<128xf32> to vector<1x128xf32>
    %cst_103 = arith.constant 1.000000e+00 : f32
    %cst_104 = arith.constant 0.000000e+00 : f32
    %298 = vector.broadcast %cst_103 : f32 to vector<16x128xf32>
    %299 = vector.broadcast %cst_104 : f32 to vector<16x128xf32>
    %300 = arith.select %291, %298, %299 : vector<16x128xi1>, vector<16x128xf32>
    %cst_105 = arith.constant dense<0.000000e+00> : vector<128xf32>
    %301 = vector.multi_reduction <add>, %300, %cst_105 [0] : vector<16x128xf32> to vector<128xf32>
    %302 = vector.shape_cast %301 : vector<128xf32> to vector<1x128xf32>
    %303 = arith.mulf %284, %295 : vector<1x128xf32>
    %304 = arith.addf %261, %303 : vector<1x128xf32>
    %305 = arith.mulf %284, %297 : vector<1x128xf32>
    %306 = arith.addf %263, %305 : vector<1x128xf32>
    %307 = arith.addf %264, %302 : vector<1x128xf32>
    %c7_i32 = arith.constant 7 : i32
    %308 = arith.index_cast %c7_i32 : i32 to index
    %c0_106 = arith.constant 0 : index
    %c0_107 = arith.constant 0 : index
    %309 = vector.load %arg1[%308, %c0_106, %c0_107] : memref<16x16x128xf32, #tpu.memory_space<vmem>>, vector<1x16x128xf32>
    %310 = vector.shape_cast %309 : vector<1x16x128xf32> to vector<16x128xf32>
    %cst_108 = arith.constant dense<0.000000e+00> : vector<128xf32>
    %311 = vector.multi_reduction <add>, %310, %cst_108 [0] : vector<16x128xf32> to vector<128xf32>
    %312 = vector.shape_cast %311 : vector<128xf32> to vector<1x128xf32>
    %cst_109 = arith.constant 1.600000e+01 : f32
    %313 = vector.broadcast %cst_109 : f32 to vector<1x128xf32>
    %314 = arith.divf %312, %313 : vector<1x128xf32>
    %315 = vector.broadcast %314 : vector<1x128xf32> to vector<16x128xf32>
    %316 = arith.subf %310, %315 : vector<16x128xf32>
    %317 = arith.mulf %316, %316 : vector<16x128xf32>
    %cst_110 = arith.constant dense<0.000000e+00> : vector<128xf32>
    %318 = vector.multi_reduction <add>, %317, %cst_110 [0] : vector<16x128xf32> to vector<128xf32>
    %319 = vector.shape_cast %318 : vector<128xf32> to vector<1x128xf32>
    %cst_111 = arith.constant 1.600000e+01 : f32
    %320 = vector.broadcast %cst_111 : f32 to vector<1x128xf32>
    %321 = arith.divf %319, %320 : vector<1x128xf32>
    %cst_112 = arith.constant 9.99999997E-7 : f32
    %322 = vector.broadcast %cst_112 : f32 to vector<1x128xf32>
    %323 = arith.addf %321, %322 : vector<1x128xf32>
    %324 = math.sqrt %323 : vector<1x128xf32>
    %cst_113 = arith.constant 9.99999997E-7 : f32
    %325 = vector.broadcast %cst_113 : f32 to vector<1x128xf32>
    %326 = arith.addf %324, %325 : vector<1x128xf32>
    %327 = tpu.reciprocal %326 : vector<1x128xf32> -> vector<1x128xf32>
    %328 = vector.broadcast %c7_i32 : i32 to vector<1x128xi32>
    %329 = arith.subi %328, %0 : vector<1x128xi32>
    %330 = arith.muli %329, %329 : vector<1x128xi32>
    %c49_i32_114 = arith.constant 49 : i32
    %331 = vector.broadcast %c49_i32_114 : i32 to vector<1x128xi32>
    %332 = arith.subi %331, %330 : vector<1x128xi32>
    %333 = vector.broadcast %332 : vector<1x128xi32> to vector<16x128xi32>
    %334 = arith.cmpi slt, %5, %333 : vector<16x128xi32>
    %cst_115 = arith.constant 0.000000e+00 : f32
    %335 = vector.broadcast %cst_115 : f32 to vector<16x128xf32>
    %336 = arith.select %334, %316, %335 : vector<16x128xi1>, vector<16x128xf32>
    %cst_116 = arith.constant dense<0.000000e+00> : vector<128xf32>
    %337 = vector.multi_reduction <add>, %336, %cst_116 [0] : vector<16x128xf32> to vector<128xf32>
    %338 = vector.shape_cast %337 : vector<128xf32> to vector<1x128xf32>
    %cst_117 = arith.constant dense<0.000000e+00> : vector<128xf32>
    %339 = vector.multi_reduction <add>, %316, %cst_117 [0] : vector<16x128xf32> to vector<128xf32>
    %340 = vector.shape_cast %339 : vector<128xf32> to vector<1x128xf32>
    %cst_118 = arith.constant 1.000000e+00 : f32
    %cst_119 = arith.constant 0.000000e+00 : f32
    %341 = vector.broadcast %cst_118 : f32 to vector<16x128xf32>
    %342 = vector.broadcast %cst_119 : f32 to vector<16x128xf32>
    %343 = arith.select %334, %341, %342 : vector<16x128xi1>, vector<16x128xf32>
    %cst_120 = arith.constant dense<0.000000e+00> : vector<128xf32>
    %344 = vector.multi_reduction <add>, %343, %cst_120 [0] : vector<16x128xf32> to vector<128xf32>
    %345 = vector.shape_cast %344 : vector<128xf32> to vector<1x128xf32>
    %346 = arith.mulf %327, %338 : vector<1x128xf32>
    %347 = arith.addf %304, %346 : vector<1x128xf32>
    %348 = arith.mulf %327, %340 : vector<1x128xf32>
    %349 = arith.addf %306, %348 : vector<1x128xf32>
    %350 = arith.addf %307, %345 : vector<1x128xf32>
    %c8_i32 = arith.constant 8 : i32
    %351 = arith.index_cast %c8_i32 : i32 to index
    %c0_121 = arith.constant 0 : index
    %c0_122 = arith.constant 0 : index
    %352 = vector.load %arg1[%351, %c0_121, %c0_122] : memref<16x16x128xf32, #tpu.memory_space<vmem>>, vector<1x16x128xf32>
    %353 = vector.shape_cast %352 : vector<1x16x128xf32> to vector<16x128xf32>
    %cst_123 = arith.constant dense<0.000000e+00> : vector<128xf32>
    %354 = vector.multi_reduction <add>, %353, %cst_123 [0] : vector<16x128xf32> to vector<128xf32>
    %355 = vector.shape_cast %354 : vector<128xf32> to vector<1x128xf32>
    %cst_124 = arith.constant 1.600000e+01 : f32
    %356 = vector.broadcast %cst_124 : f32 to vector<1x128xf32>
    %357 = arith.divf %355, %356 : vector<1x128xf32>
    %358 = vector.broadcast %357 : vector<1x128xf32> to vector<16x128xf32>
    %359 = arith.subf %353, %358 : vector<16x128xf32>
    %360 = arith.mulf %359, %359 : vector<16x128xf32>
    %cst_125 = arith.constant dense<0.000000e+00> : vector<128xf32>
    %361 = vector.multi_reduction <add>, %360, %cst_125 [0] : vector<16x128xf32> to vector<128xf32>
    %362 = vector.shape_cast %361 : vector<128xf32> to vector<1x128xf32>
    %cst_126 = arith.constant 1.600000e+01 : f32
    %363 = vector.broadcast %cst_126 : f32 to vector<1x128xf32>
    %364 = arith.divf %362, %363 : vector<1x128xf32>
    %cst_127 = arith.constant 9.99999997E-7 : f32
    %365 = vector.broadcast %cst_127 : f32 to vector<1x128xf32>
    %366 = arith.addf %364, %365 : vector<1x128xf32>
    %367 = math.sqrt %366 : vector<1x128xf32>
    %cst_128 = arith.constant 9.99999997E-7 : f32
    %368 = vector.broadcast %cst_128 : f32 to vector<1x128xf32>
    %369 = arith.addf %367, %368 : vector<1x128xf32>
    %370 = tpu.reciprocal %369 : vector<1x128xf32> -> vector<1x128xf32>
    %371 = vector.broadcast %c8_i32 : i32 to vector<1x128xi32>
    %372 = arith.subi %371, %0 : vector<1x128xi32>
    %373 = arith.muli %372, %372 : vector<1x128xi32>
    %c49_i32_129 = arith.constant 49 : i32
    %374 = vector.broadcast %c49_i32_129 : i32 to vector<1x128xi32>
    %375 = arith.subi %374, %373 : vector<1x128xi32>
    %376 = vector.broadcast %375 : vector<1x128xi32> to vector<16x128xi32>
    %377 = arith.cmpi slt, %5, %376 : vector<16x128xi32>
    %cst_130 = arith.constant 0.000000e+00 : f32
    %378 = vector.broadcast %cst_130 : f32 to vector<16x128xf32>
    %379 = arith.select %377, %359, %378 : vector<16x128xi1>, vector<16x128xf32>
    %cst_131 = arith.constant dense<0.000000e+00> : vector<128xf32>
    %380 = vector.multi_reduction <add>, %379, %cst_131 [0] : vector<16x128xf32> to vector<128xf32>
    %381 = vector.shape_cast %380 : vector<128xf32> to vector<1x128xf32>
    %cst_132 = arith.constant dense<0.000000e+00> : vector<128xf32>
    %382 = vector.multi_reduction <add>, %359, %cst_132 [0] : vector<16x128xf32> to vector<128xf32>
    %383 = vector.shape_cast %382 : vector<128xf32> to vector<1x128xf32>
    %cst_133 = arith.constant 1.000000e+00 : f32
    %cst_134 = arith.constant 0.000000e+00 : f32
    %384 = vector.broadcast %cst_133 : f32 to vector<16x128xf32>
    %385 = vector.broadcast %cst_134 : f32 to vector<16x128xf32>
    %386 = arith.select %377, %384, %385 : vector<16x128xi1>, vector<16x128xf32>
    %cst_135 = arith.constant dense<0.000000e+00> : vector<128xf32>
    %387 = vector.multi_reduction <add>, %386, %cst_135 [0] : vector<16x128xf32> to vector<128xf32>
    %388 = vector.shape_cast %387 : vector<128xf32> to vector<1x128xf32>
    %389 = arith.mulf %370, %381 : vector<1x128xf32>
    %390 = arith.addf %347, %389 : vector<1x128xf32>
    %391 = arith.mulf %370, %383 : vector<1x128xf32>
    %392 = arith.addf %349, %391 : vector<1x128xf32>
    %393 = arith.addf %350, %388 : vector<1x128xf32>
    %c9_i32 = arith.constant 9 : i32
    %394 = arith.index_cast %c9_i32 : i32 to index
    %c0_136 = arith.constant 0 : index
    %c0_137 = arith.constant 0 : index
    %395 = vector.load %arg1[%394, %c0_136, %c0_137] : memref<16x16x128xf32, #tpu.memory_space<vmem>>, vector<1x16x128xf32>
    %396 = vector.shape_cast %395 : vector<1x16x128xf32> to vector<16x128xf32>
    %cst_138 = arith.constant dense<0.000000e+00> : vector<128xf32>
    %397 = vector.multi_reduction <add>, %396, %cst_138 [0] : vector<16x128xf32> to vector<128xf32>
    %398 = vector.shape_cast %397 : vector<128xf32> to vector<1x128xf32>
    %cst_139 = arith.constant 1.600000e+01 : f32
    %399 = vector.broadcast %cst_139 : f32 to vector<1x128xf32>
    %400 = arith.divf %398, %399 : vector<1x128xf32>
    %401 = vector.broadcast %400 : vector<1x128xf32> to vector<16x128xf32>
    %402 = arith.subf %396, %401 : vector<16x128xf32>
    %403 = arith.mulf %402, %402 : vector<16x128xf32>
    %cst_140 = arith.constant dense<0.000000e+00> : vector<128xf32>
    %404 = vector.multi_reduction <add>, %403, %cst_140 [0] : vector<16x128xf32> to vector<128xf32>
    %405 = vector.shape_cast %404 : vector<128xf32> to vector<1x128xf32>
    %cst_141 = arith.constant 1.600000e+01 : f32
    %406 = vector.broadcast %cst_141 : f32 to vector<1x128xf32>
    %407 = arith.divf %405, %406 : vector<1x128xf32>
    %cst_142 = arith.constant 9.99999997E-7 : f32
    %408 = vector.broadcast %cst_142 : f32 to vector<1x128xf32>
    %409 = arith.addf %407, %408 : vector<1x128xf32>
    %410 = math.sqrt %409 : vector<1x128xf32>
    %cst_143 = arith.constant 9.99999997E-7 : f32
    %411 = vector.broadcast %cst_143 : f32 to vector<1x128xf32>
    %412 = arith.addf %410, %411 : vector<1x128xf32>
    %413 = tpu.reciprocal %412 : vector<1x128xf32> -> vector<1x128xf32>
    %414 = vector.broadcast %c9_i32 : i32 to vector<1x128xi32>
    %415 = arith.subi %414, %0 : vector<1x128xi32>
    %416 = arith.muli %415, %415 : vector<1x128xi32>
    %c49_i32_144 = arith.constant 49 : i32
    %417 = vector.broadcast %c49_i32_144 : i32 to vector<1x128xi32>
    %418 = arith.subi %417, %416 : vector<1x128xi32>
    %419 = vector.broadcast %418 : vector<1x128xi32> to vector<16x128xi32>
    %420 = arith.cmpi slt, %5, %419 : vector<16x128xi32>
    %cst_145 = arith.constant 0.000000e+00 : f32
    %421 = vector.broadcast %cst_145 : f32 to vector<16x128xf32>
    %422 = arith.select %420, %402, %421 : vector<16x128xi1>, vector<16x128xf32>
    %cst_146 = arith.constant dense<0.000000e+00> : vector<128xf32>
    %423 = vector.multi_reduction <add>, %422, %cst_146 [0] : vector<16x128xf32> to vector<128xf32>
    %424 = vector.shape_cast %423 : vector<128xf32> to vector<1x128xf32>
    %cst_147 = arith.constant dense<0.000000e+00> : vector<128xf32>
    %425 = vector.multi_reduction <add>, %402, %cst_147 [0] : vector<16x128xf32> to vector<128xf32>
    %426 = vector.shape_cast %425 : vector<128xf32> to vector<1x128xf32>
    %cst_148 = arith.constant 1.000000e+00 : f32
    %cst_149 = arith.constant 0.000000e+00 : f32
    %427 = vector.broadcast %cst_148 : f32 to vector<16x128xf32>
    %428 = vector.broadcast %cst_149 : f32 to vector<16x128xf32>
    %429 = arith.select %420, %427, %428 : vector<16x128xi1>, vector<16x128xf32>
    %cst_150 = arith.constant dense<0.000000e+00> : vector<128xf32>
    %430 = vector.multi_reduction <add>, %429, %cst_150 [0] : vector<16x128xf32> to vector<128xf32>
    %431 = vector.shape_cast %430 : vector<128xf32> to vector<1x128xf32>
    %432 = arith.mulf %413, %424 : vector<1x128xf32>
    %433 = arith.addf %390, %432 : vector<1x128xf32>
    %434 = arith.mulf %413, %426 : vector<1x128xf32>
    %435 = arith.addf %392, %434 : vector<1x128xf32>
    %436 = arith.addf %393, %431 : vector<1x128xf32>
    %c10_i32 = arith.constant 10 : i32
    %437 = arith.index_cast %c10_i32 : i32 to index
    %c0_151 = arith.constant 0 : index
    %c0_152 = arith.constant 0 : index
    %438 = vector.load %arg1[%437, %c0_151, %c0_152] : memref<16x16x128xf32, #tpu.memory_space<vmem>>, vector<1x16x128xf32>
    %439 = vector.shape_cast %438 : vector<1x16x128xf32> to vector<16x128xf32>
    %cst_153 = arith.constant dense<0.000000e+00> : vector<128xf32>
    %440 = vector.multi_reduction <add>, %439, %cst_153 [0] : vector<16x128xf32> to vector<128xf32>
    %441 = vector.shape_cast %440 : vector<128xf32> to vector<1x128xf32>
    %cst_154 = arith.constant 1.600000e+01 : f32
    %442 = vector.broadcast %cst_154 : f32 to vector<1x128xf32>
    %443 = arith.divf %441, %442 : vector<1x128xf32>
    %444 = vector.broadcast %443 : vector<1x128xf32> to vector<16x128xf32>
    %445 = arith.subf %439, %444 : vector<16x128xf32>
    %446 = arith.mulf %445, %445 : vector<16x128xf32>
    %cst_155 = arith.constant dense<0.000000e+00> : vector<128xf32>
    %447 = vector.multi_reduction <add>, %446, %cst_155 [0] : vector<16x128xf32> to vector<128xf32>
    %448 = vector.shape_cast %447 : vector<128xf32> to vector<1x128xf32>
    %cst_156 = arith.constant 1.600000e+01 : f32
    %449 = vector.broadcast %cst_156 : f32 to vector<1x128xf32>
    %450 = arith.divf %448, %449 : vector<1x128xf32>
    %cst_157 = arith.constant 9.99999997E-7 : f32
    %451 = vector.broadcast %cst_157 : f32 to vector<1x128xf32>
    %452 = arith.addf %450, %451 : vector<1x128xf32>
    %453 = math.sqrt %452 : vector<1x128xf32>
    %cst_158 = arith.constant 9.99999997E-7 : f32
    %454 = vector.broadcast %cst_158 : f32 to vector<1x128xf32>
    %455 = arith.addf %453, %454 : vector<1x128xf32>
    %456 = tpu.reciprocal %455 : vector<1x128xf32> -> vector<1x128xf32>
    %457 = vector.broadcast %c10_i32 : i32 to vector<1x128xi32>
    %458 = arith.subi %457, %0 : vector<1x128xi32>
    %459 = arith.muli %458, %458 : vector<1x128xi32>
    %c49_i32_159 = arith.constant 49 : i32
    %460 = vector.broadcast %c49_i32_159 : i32 to vector<1x128xi32>
    %461 = arith.subi %460, %459 : vector<1x128xi32>
    %462 = vector.broadcast %461 : vector<1x128xi32> to vector<16x128xi32>
    %463 = arith.cmpi slt, %5, %462 : vector<16x128xi32>
    %cst_160 = arith.constant 0.000000e+00 : f32
    %464 = vector.broadcast %cst_160 : f32 to vector<16x128xf32>
    %465 = arith.select %463, %445, %464 : vector<16x128xi1>, vector<16x128xf32>
    %cst_161 = arith.constant dense<0.000000e+00> : vector<128xf32>
    %466 = vector.multi_reduction <add>, %465, %cst_161 [0] : vector<16x128xf32> to vector<128xf32>
    %467 = vector.shape_cast %466 : vector<128xf32> to vector<1x128xf32>
    %cst_162 = arith.constant dense<0.000000e+00> : vector<128xf32>
    %468 = vector.multi_reduction <add>, %445, %cst_162 [0] : vector<16x128xf32> to vector<128xf32>
    %469 = vector.shape_cast %468 : vector<128xf32> to vector<1x128xf32>
    %cst_163 = arith.constant 1.000000e+00 : f32
    %cst_164 = arith.constant 0.000000e+00 : f32
    %470 = vector.broadcast %cst_163 : f32 to vector<16x128xf32>
    %471 = vector.broadcast %cst_164 : f32 to vector<16x128xf32>
    %472 = arith.select %463, %470, %471 : vector<16x128xi1>, vector<16x128xf32>
    %cst_165 = arith.constant dense<0.000000e+00> : vector<128xf32>
    %473 = vector.multi_reduction <add>, %472, %cst_165 [0] : vector<16x128xf32> to vector<128xf32>
    %474 = vector.shape_cast %473 : vector<128xf32> to vector<1x128xf32>
    %475 = arith.mulf %456, %467 : vector<1x128xf32>
    %476 = arith.addf %433, %475 : vector<1x128xf32>
    %477 = arith.mulf %456, %469 : vector<1x128xf32>
    %478 = arith.addf %435, %477 : vector<1x128xf32>
    %479 = arith.addf %436, %474 : vector<1x128xf32>
    %c11_i32 = arith.constant 11 : i32
    %480 = arith.index_cast %c11_i32 : i32 to index
    %c0_166 = arith.constant 0 : index
    %c0_167 = arith.constant 0 : index
    %481 = vector.load %arg1[%480, %c0_166, %c0_167] : memref<16x16x128xf32, #tpu.memory_space<vmem>>, vector<1x16x128xf32>
    %482 = vector.shape_cast %481 : vector<1x16x128xf32> to vector<16x128xf32>
    %cst_168 = arith.constant dense<0.000000e+00> : vector<128xf32>
    %483 = vector.multi_reduction <add>, %482, %cst_168 [0] : vector<16x128xf32> to vector<128xf32>
    %484 = vector.shape_cast %483 : vector<128xf32> to vector<1x128xf32>
    %cst_169 = arith.constant 1.600000e+01 : f32
    %485 = vector.broadcast %cst_169 : f32 to vector<1x128xf32>
    %486 = arith.divf %484, %485 : vector<1x128xf32>
    %487 = vector.broadcast %486 : vector<1x128xf32> to vector<16x128xf32>
    %488 = arith.subf %482, %487 : vector<16x128xf32>
    %489 = arith.mulf %488, %488 : vector<16x128xf32>
    %cst_170 = arith.constant dense<0.000000e+00> : vector<128xf32>
    %490 = vector.multi_reduction <add>, %489, %cst_170 [0] : vector<16x128xf32> to vector<128xf32>
    %491 = vector.shape_cast %490 : vector<128xf32> to vector<1x128xf32>
    %cst_171 = arith.constant 1.600000e+01 : f32
    %492 = vector.broadcast %cst_171 : f32 to vector<1x128xf32>
    %493 = arith.divf %491, %492 : vector<1x128xf32>
    %cst_172 = arith.constant 9.99999997E-7 : f32
    %494 = vector.broadcast %cst_172 : f32 to vector<1x128xf32>
    %495 = arith.addf %493, %494 : vector<1x128xf32>
    %496 = math.sqrt %495 : vector<1x128xf32>
    %cst_173 = arith.constant 9.99999997E-7 : f32
    %497 = vector.broadcast %cst_173 : f32 to vector<1x128xf32>
    %498 = arith.addf %496, %497 : vector<1x128xf32>
    %499 = tpu.reciprocal %498 : vector<1x128xf32> -> vector<1x128xf32>
    %500 = vector.broadcast %c11_i32 : i32 to vector<1x128xi32>
    %501 = arith.subi %500, %0 : vector<1x128xi32>
    %502 = arith.muli %501, %501 : vector<1x128xi32>
    %c49_i32_174 = arith.constant 49 : i32
    %503 = vector.broadcast %c49_i32_174 : i32 to vector<1x128xi32>
    %504 = arith.subi %503, %502 : vector<1x128xi32>
    %505 = vector.broadcast %504 : vector<1x128xi32> to vector<16x128xi32>
    %506 = arith.cmpi slt, %5, %505 : vector<16x128xi32>
    %cst_175 = arith.constant 0.000000e+00 : f32
    %507 = vector.broadcast %cst_175 : f32 to vector<16x128xf32>
    %508 = arith.select %506, %488, %507 : vector<16x128xi1>, vector<16x128xf32>
    %cst_176 = arith.constant dense<0.000000e+00> : vector<128xf32>
    %509 = vector.multi_reduction <add>, %508, %cst_176 [0] : vector<16x128xf32> to vector<128xf32>
    %510 = vector.shape_cast %509 : vector<128xf32> to vector<1x128xf32>
    %cst_177 = arith.constant dense<0.000000e+00> : vector<128xf32>
    %511 = vector.multi_reduction <add>, %488, %cst_177 [0] : vector<16x128xf32> to vector<128xf32>
    %512 = vector.shape_cast %511 : vector<128xf32> to vector<1x128xf32>
    %cst_178 = arith.constant 1.000000e+00 : f32
    %cst_179 = arith.constant 0.000000e+00 : f32
    %513 = vector.broadcast %cst_178 : f32 to vector<16x128xf32>
    %514 = vector.broadcast %cst_179 : f32 to vector<16x128xf32>
    %515 = arith.select %506, %513, %514 : vector<16x128xi1>, vector<16x128xf32>
    %cst_180 = arith.constant dense<0.000000e+00> : vector<128xf32>
    %516 = vector.multi_reduction <add>, %515, %cst_180 [0] : vector<16x128xf32> to vector<128xf32>
    %517 = vector.shape_cast %516 : vector<128xf32> to vector<1x128xf32>
    %518 = arith.mulf %499, %510 : vector<1x128xf32>
    %519 = arith.addf %476, %518 : vector<1x128xf32>
    %520 = arith.mulf %499, %512 : vector<1x128xf32>
    %521 = arith.addf %478, %520 : vector<1x128xf32>
    %522 = arith.addf %479, %517 : vector<1x128xf32>
    %c12_i32 = arith.constant 12 : i32
    %523 = arith.index_cast %c12_i32 : i32 to index
    %c0_181 = arith.constant 0 : index
    %c0_182 = arith.constant 0 : index
    %524 = vector.load %arg1[%523, %c0_181, %c0_182] : memref<16x16x128xf32, #tpu.memory_space<vmem>>, vector<1x16x128xf32>
    %525 = vector.shape_cast %524 : vector<1x16x128xf32> to vector<16x128xf32>
    %cst_183 = arith.constant dense<0.000000e+00> : vector<128xf32>
    %526 = vector.multi_reduction <add>, %525, %cst_183 [0] : vector<16x128xf32> to vector<128xf32>
    %527 = vector.shape_cast %526 : vector<128xf32> to vector<1x128xf32>
    %cst_184 = arith.constant 1.600000e+01 : f32
    %528 = vector.broadcast %cst_184 : f32 to vector<1x128xf32>
    %529 = arith.divf %527, %528 : vector<1x128xf32>
    %530 = vector.broadcast %529 : vector<1x128xf32> to vector<16x128xf32>
    %531 = arith.subf %525, %530 : vector<16x128xf32>
    %532 = arith.mulf %531, %531 : vector<16x128xf32>
    %cst_185 = arith.constant dense<0.000000e+00> : vector<128xf32>
    %533 = vector.multi_reduction <add>, %532, %cst_185 [0] : vector<16x128xf32> to vector<128xf32>
    %534 = vector.shape_cast %533 : vector<128xf32> to vector<1x128xf32>
    %cst_186 = arith.constant 1.600000e+01 : f32
    %535 = vector.broadcast %cst_186 : f32 to vector<1x128xf32>
    %536 = arith.divf %534, %535 : vector<1x128xf32>
    %cst_187 = arith.constant 9.99999997E-7 : f32
    %537 = vector.broadcast %cst_187 : f32 to vector<1x128xf32>
    %538 = arith.addf %536, %537 : vector<1x128xf32>
    %539 = math.sqrt %538 : vector<1x128xf32>
    %cst_188 = arith.constant 9.99999997E-7 : f32
    %540 = vector.broadcast %cst_188 : f32 to vector<1x128xf32>
    %541 = arith.addf %539, %540 : vector<1x128xf32>
    %542 = tpu.reciprocal %541 : vector<1x128xf32> -> vector<1x128xf32>
    %543 = vector.broadcast %c12_i32 : i32 to vector<1x128xi32>
    %544 = arith.subi %543, %0 : vector<1x128xi32>
    %545 = arith.muli %544, %544 : vector<1x128xi32>
    %c49_i32_189 = arith.constant 49 : i32
    %546 = vector.broadcast %c49_i32_189 : i32 to vector<1x128xi32>
    %547 = arith.subi %546, %545 : vector<1x128xi32>
    %548 = vector.broadcast %547 : vector<1x128xi32> to vector<16x128xi32>
    %549 = arith.cmpi slt, %5, %548 : vector<16x128xi32>
    %cst_190 = arith.constant 0.000000e+00 : f32
    %550 = vector.broadcast %cst_190 : f32 to vector<16x128xf32>
    %551 = arith.select %549, %531, %550 : vector<16x128xi1>, vector<16x128xf32>
    %cst_191 = arith.constant dense<0.000000e+00> : vector<128xf32>
    %552 = vector.multi_reduction <add>, %551, %cst_191 [0] : vector<16x128xf32> to vector<128xf32>
    %553 = vector.shape_cast %552 : vector<128xf32> to vector<1x128xf32>
    %cst_192 = arith.constant dense<0.000000e+00> : vector<128xf32>
    %554 = vector.multi_reduction <add>, %531, %cst_192 [0] : vector<16x128xf32> to vector<128xf32>
    %555 = vector.shape_cast %554 : vector<128xf32> to vector<1x128xf32>
    %cst_193 = arith.constant 1.000000e+00 : f32
    %cst_194 = arith.constant 0.000000e+00 : f32
    %556 = vector.broadcast %cst_193 : f32 to vector<16x128xf32>
    %557 = vector.broadcast %cst_194 : f32 to vector<16x128xf32>
    %558 = arith.select %549, %556, %557 : vector<16x128xi1>, vector<16x128xf32>
    %cst_195 = arith.constant dense<0.000000e+00> : vector<128xf32>
    %559 = vector.multi_reduction <add>, %558, %cst_195 [0] : vector<16x128xf32> to vector<128xf32>
    %560 = vector.shape_cast %559 : vector<128xf32> to vector<1x128xf32>
    %561 = arith.mulf %542, %553 : vector<1x128xf32>
    %562 = arith.addf %519, %561 : vector<1x128xf32>
    %563 = arith.mulf %542, %555 : vector<1x128xf32>
    %564 = arith.addf %521, %563 : vector<1x128xf32>
    %565 = arith.addf %522, %560 : vector<1x128xf32>
    %c13_i32 = arith.constant 13 : i32
    %566 = arith.index_cast %c13_i32 : i32 to index
    %c0_196 = arith.constant 0 : index
    %c0_197 = arith.constant 0 : index
    %567 = vector.load %arg1[%566, %c0_196, %c0_197] : memref<16x16x128xf32, #tpu.memory_space<vmem>>, vector<1x16x128xf32>
    %568 = vector.shape_cast %567 : vector<1x16x128xf32> to vector<16x128xf32>
    %cst_198 = arith.constant dense<0.000000e+00> : vector<128xf32>
    %569 = vector.multi_reduction <add>, %568, %cst_198 [0] : vector<16x128xf32> to vector<128xf32>
    %570 = vector.shape_cast %569 : vector<128xf32> to vector<1x128xf32>
    %cst_199 = arith.constant 1.600000e+01 : f32
    %571 = vector.broadcast %cst_199 : f32 to vector<1x128xf32>
    %572 = arith.divf %570, %571 : vector<1x128xf32>
    %573 = vector.broadcast %572 : vector<1x128xf32> to vector<16x128xf32>
    %574 = arith.subf %568, %573 : vector<16x128xf32>
    %575 = arith.mulf %574, %574 : vector<16x128xf32>
    %cst_200 = arith.constant dense<0.000000e+00> : vector<128xf32>
    %576 = vector.multi_reduction <add>, %575, %cst_200 [0] : vector<16x128xf32> to vector<128xf32>
    %577 = vector.shape_cast %576 : vector<128xf32> to vector<1x128xf32>
    %cst_201 = arith.constant 1.600000e+01 : f32
    %578 = vector.broadcast %cst_201 : f32 to vector<1x128xf32>
    %579 = arith.divf %577, %578 : vector<1x128xf32>
    %cst_202 = arith.constant 9.99999997E-7 : f32
    %580 = vector.broadcast %cst_202 : f32 to vector<1x128xf32>
    %581 = arith.addf %579, %580 : vector<1x128xf32>
    %582 = math.sqrt %581 : vector<1x128xf32>
    %cst_203 = arith.constant 9.99999997E-7 : f32
    %583 = vector.broadcast %cst_203 : f32 to vector<1x128xf32>
    %584 = arith.addf %582, %583 : vector<1x128xf32>
    %585 = tpu.reciprocal %584 : vector<1x128xf32> -> vector<1x128xf32>
    %586 = vector.broadcast %c13_i32 : i32 to vector<1x128xi32>
    %587 = arith.subi %586, %0 : vector<1x128xi32>
    %588 = arith.muli %587, %587 : vector<1x128xi32>
    %c49_i32_204 = arith.constant 49 : i32
    %589 = vector.broadcast %c49_i32_204 : i32 to vector<1x128xi32>
    %590 = arith.subi %589, %588 : vector<1x128xi32>
    %591 = vector.broadcast %590 : vector<1x128xi32> to vector<16x128xi32>
    %592 = arith.cmpi slt, %5, %591 : vector<16x128xi32>
    %cst_205 = arith.constant 0.000000e+00 : f32
    %593 = vector.broadcast %cst_205 : f32 to vector<16x128xf32>
    %594 = arith.select %592, %574, %593 : vector<16x128xi1>, vector<16x128xf32>
    %cst_206 = arith.constant dense<0.000000e+00> : vector<128xf32>
    %595 = vector.multi_reduction <add>, %594, %cst_206 [0] : vector<16x128xf32> to vector<128xf32>
    %596 = vector.shape_cast %595 : vector<128xf32> to vector<1x128xf32>
    %cst_207 = arith.constant dense<0.000000e+00> : vector<128xf32>
    %597 = vector.multi_reduction <add>, %574, %cst_207 [0] : vector<16x128xf32> to vector<128xf32>
    %598 = vector.shape_cast %597 : vector<128xf32> to vector<1x128xf32>
    %cst_208 = arith.constant 1.000000e+00 : f32
    %cst_209 = arith.constant 0.000000e+00 : f32
    %599 = vector.broadcast %cst_208 : f32 to vector<16x128xf32>
    %600 = vector.broadcast %cst_209 : f32 to vector<16x128xf32>
    %601 = arith.select %592, %599, %600 : vector<16x128xi1>, vector<16x128xf32>
    %cst_210 = arith.constant dense<0.000000e+00> : vector<128xf32>
    %602 = vector.multi_reduction <add>, %601, %cst_210 [0] : vector<16x128xf32> to vector<128xf32>
    %603 = vector.shape_cast %602 : vector<128xf32> to vector<1x128xf32>
    %604 = arith.mulf %585, %596 : vector<1x128xf32>
    %605 = arith.addf %562, %604 : vector<1x128xf32>
    %606 = arith.mulf %585, %598 : vector<1x128xf32>
    %607 = arith.addf %564, %606 : vector<1x128xf32>
    %608 = arith.addf %565, %603 : vector<1x128xf32>
    %c14_i32 = arith.constant 14 : i32
    %609 = arith.index_cast %c14_i32 : i32 to index
    %c0_211 = arith.constant 0 : index
    %c0_212 = arith.constant 0 : index
    %610 = vector.load %arg1[%609, %c0_211, %c0_212] : memref<16x16x128xf32, #tpu.memory_space<vmem>>, vector<1x16x128xf32>
    %611 = vector.shape_cast %610 : vector<1x16x128xf32> to vector<16x128xf32>
    %cst_213 = arith.constant dense<0.000000e+00> : vector<128xf32>
    %612 = vector.multi_reduction <add>, %611, %cst_213 [0] : vector<16x128xf32> to vector<128xf32>
    %613 = vector.shape_cast %612 : vector<128xf32> to vector<1x128xf32>
    %cst_214 = arith.constant 1.600000e+01 : f32
    %614 = vector.broadcast %cst_214 : f32 to vector<1x128xf32>
    %615 = arith.divf %613, %614 : vector<1x128xf32>
    %616 = vector.broadcast %615 : vector<1x128xf32> to vector<16x128xf32>
    %617 = arith.subf %611, %616 : vector<16x128xf32>
    %618 = arith.mulf %617, %617 : vector<16x128xf32>
    %cst_215 = arith.constant dense<0.000000e+00> : vector<128xf32>
    %619 = vector.multi_reduction <add>, %618, %cst_215 [0] : vector<16x128xf32> to vector<128xf32>
    %620 = vector.shape_cast %619 : vector<128xf32> to vector<1x128xf32>
    %cst_216 = arith.constant 1.600000e+01 : f32
    %621 = vector.broadcast %cst_216 : f32 to vector<1x128xf32>
    %622 = arith.divf %620, %621 : vector<1x128xf32>
    %cst_217 = arith.constant 9.99999997E-7 : f32
    %623 = vector.broadcast %cst_217 : f32 to vector<1x128xf32>
    %624 = arith.addf %622, %623 : vector<1x128xf32>
    %625 = math.sqrt %624 : vector<1x128xf32>
    %cst_218 = arith.constant 9.99999997E-7 : f32
    %626 = vector.broadcast %cst_218 : f32 to vector<1x128xf32>
    %627 = arith.addf %625, %626 : vector<1x128xf32>
    %628 = tpu.reciprocal %627 : vector<1x128xf32> -> vector<1x128xf32>
    %629 = vector.broadcast %c14_i32 : i32 to vector<1x128xi32>
    %630 = arith.subi %629, %0 : vector<1x128xi32>
    %631 = arith.muli %630, %630 : vector<1x128xi32>
    %c49_i32_219 = arith.constant 49 : i32
    %632 = vector.broadcast %c49_i32_219 : i32 to vector<1x128xi32>
    %633 = arith.subi %632, %631 : vector<1x128xi32>
    %634 = vector.broadcast %633 : vector<1x128xi32> to vector<16x128xi32>
    %635 = arith.cmpi slt, %5, %634 : vector<16x128xi32>
    %cst_220 = arith.constant 0.000000e+00 : f32
    %636 = vector.broadcast %cst_220 : f32 to vector<16x128xf32>
    %637 = arith.select %635, %617, %636 : vector<16x128xi1>, vector<16x128xf32>
    %cst_221 = arith.constant dense<0.000000e+00> : vector<128xf32>
    %638 = vector.multi_reduction <add>, %637, %cst_221 [0] : vector<16x128xf32> to vector<128xf32>
    %639 = vector.shape_cast %638 : vector<128xf32> to vector<1x128xf32>
    %cst_222 = arith.constant dense<0.000000e+00> : vector<128xf32>
    %640 = vector.multi_reduction <add>, %617, %cst_222 [0] : vector<16x128xf32> to vector<128xf32>
    %641 = vector.shape_cast %640 : vector<128xf32> to vector<1x128xf32>
    %cst_223 = arith.constant 1.000000e+00 : f32
    %cst_224 = arith.constant 0.000000e+00 : f32
    %642 = vector.broadcast %cst_223 : f32 to vector<16x128xf32>
    %643 = vector.broadcast %cst_224 : f32 to vector<16x128xf32>
    %644 = arith.select %635, %642, %643 : vector<16x128xi1>, vector<16x128xf32>
    %cst_225 = arith.constant dense<0.000000e+00> : vector<128xf32>
    %645 = vector.multi_reduction <add>, %644, %cst_225 [0] : vector<16x128xf32> to vector<128xf32>
    %646 = vector.shape_cast %645 : vector<128xf32> to vector<1x128xf32>
    %647 = arith.mulf %628, %639 : vector<1x128xf32>
    %648 = arith.addf %605, %647 : vector<1x128xf32>
    %649 = arith.mulf %628, %641 : vector<1x128xf32>
    %650 = arith.addf %607, %649 : vector<1x128xf32>
    %651 = arith.addf %608, %646 : vector<1x128xf32>
    %c15_i32 = arith.constant 15 : i32
    %652 = arith.index_cast %c15_i32 : i32 to index
    %c0_226 = arith.constant 0 : index
    %c0_227 = arith.constant 0 : index
    %653 = vector.load %arg1[%652, %c0_226, %c0_227] : memref<16x16x128xf32, #tpu.memory_space<vmem>>, vector<1x16x128xf32>
    %654 = vector.shape_cast %653 : vector<1x16x128xf32> to vector<16x128xf32>
    %cst_228 = arith.constant dense<0.000000e+00> : vector<128xf32>
    %655 = vector.multi_reduction <add>, %654, %cst_228 [0] : vector<16x128xf32> to vector<128xf32>
    %656 = vector.shape_cast %655 : vector<128xf32> to vector<1x128xf32>
    %cst_229 = arith.constant 1.600000e+01 : f32
    %657 = vector.broadcast %cst_229 : f32 to vector<1x128xf32>
    %658 = arith.divf %656, %657 : vector<1x128xf32>
    %659 = vector.broadcast %658 : vector<1x128xf32> to vector<16x128xf32>
    %660 = arith.subf %654, %659 : vector<16x128xf32>
    %661 = arith.mulf %660, %660 : vector<16x128xf32>
    %cst_230 = arith.constant dense<0.000000e+00> : vector<128xf32>
    %662 = vector.multi_reduction <add>, %661, %cst_230 [0] : vector<16x128xf32> to vector<128xf32>
    %663 = vector.shape_cast %662 : vector<128xf32> to vector<1x128xf32>
    %cst_231 = arith.constant 1.600000e+01 : f32
    %664 = vector.broadcast %cst_231 : f32 to vector<1x128xf32>
    %665 = arith.divf %663, %664 : vector<1x128xf32>
    %cst_232 = arith.constant 9.99999997E-7 : f32
    %666 = vector.broadcast %cst_232 : f32 to vector<1x128xf32>
    %667 = arith.addf %665, %666 : vector<1x128xf32>
    %668 = math.sqrt %667 : vector<1x128xf32>
    %cst_233 = arith.constant 9.99999997E-7 : f32
    %669 = vector.broadcast %cst_233 : f32 to vector<1x128xf32>
    %670 = arith.addf %668, %669 : vector<1x128xf32>
    %671 = tpu.reciprocal %670 : vector<1x128xf32> -> vector<1x128xf32>
    %672 = vector.broadcast %c15_i32 : i32 to vector<1x128xi32>
    %673 = arith.subi %672, %0 : vector<1x128xi32>
    %674 = arith.muli %673, %673 : vector<1x128xi32>
    %c49_i32_234 = arith.constant 49 : i32
    %675 = vector.broadcast %c49_i32_234 : i32 to vector<1x128xi32>
    %676 = arith.subi %675, %674 : vector<1x128xi32>
    %677 = vector.broadcast %676 : vector<1x128xi32> to vector<16x128xi32>
    %678 = arith.cmpi slt, %5, %677 : vector<16x128xi32>
    %cst_235 = arith.constant 0.000000e+00 : f32
    %679 = vector.broadcast %cst_235 : f32 to vector<16x128xf32>
    %680 = arith.select %678, %660, %679 : vector<16x128xi1>, vector<16x128xf32>
    %cst_236 = arith.constant dense<0.000000e+00> : vector<128xf32>
    %681 = vector.multi_reduction <add>, %680, %cst_236 [0] : vector<16x128xf32> to vector<128xf32>
    %682 = vector.shape_cast %681 : vector<128xf32> to vector<1x128xf32>
    %cst_237 = arith.constant dense<0.000000e+00> : vector<128xf32>
    %683 = vector.multi_reduction <add>, %660, %cst_237 [0] : vector<16x128xf32> to vector<128xf32>
    %684 = vector.shape_cast %683 : vector<128xf32> to vector<1x128xf32>
    %cst_238 = arith.constant 1.000000e+00 : f32
    %cst_239 = arith.constant 0.000000e+00 : f32
    %685 = vector.broadcast %cst_238 : f32 to vector<16x128xf32>
    %686 = vector.broadcast %cst_239 : f32 to vector<16x128xf32>
    %687 = arith.select %678, %685, %686 : vector<16x128xi1>, vector<16x128xf32>
    %cst_240 = arith.constant dense<0.000000e+00> : vector<128xf32>
    %688 = vector.multi_reduction <add>, %687, %cst_240 [0] : vector<16x128xf32> to vector<128xf32>
    %689 = vector.shape_cast %688 : vector<128xf32> to vector<1x128xf32>
    %690 = arith.mulf %671, %682 : vector<1x128xf32>
    %691 = arith.addf %648, %690 : vector<1x128xf32>
    %692 = arith.mulf %671, %684 : vector<1x128xf32>
    %693 = arith.addf %650, %692 : vector<1x128xf32>
    %694 = arith.addf %651, %689 : vector<1x128xf32>
    %c16_i32 = arith.constant 16 : i32
    %cst_241 = arith.constant 2.560000e+02 : f32
    %695 = vector.broadcast %cst_241 : f32 to vector<1x128xf32>
    %696 = arith.subf %695, %694 : vector<1x128xf32>
    %cst_242 = arith.constant 9.99999997E-7 : f32
    %697 = vector.broadcast %cst_242 : f32 to vector<1x128xf32>
    %698 = arith.addf %694, %697 : vector<1x128xf32>
    %699 = tpu.reciprocal %698 : vector<1x128xf32> -> vector<1x128xf32>
    %700 = arith.mulf %691, %699 : vector<1x128xf32>
    %701 = arith.subf %693, %691 : vector<1x128xf32>
    %cst_243 = arith.constant 9.99999997E-7 : f32
    %702 = vector.broadcast %cst_243 : f32 to vector<1x128xf32>
    %703 = arith.addf %696, %702 : vector<1x128xf32>
    %704 = tpu.reciprocal %703 : vector<1x128xf32> -> vector<1x128xf32>
    %705 = arith.mulf %701, %704 : vector<1x128xf32>
    %c0_244 = arith.constant 0 : index
    %c0_245 = arith.constant 0 : index
    %706 = vector.load %arg3[%c0_244, %c0_245] : memref<2x128xf32, #tpu.memory_space<vmem>>, vector<1x128xf32>
    tpu.vector_store %arg3[%c0_244, %c0_245], %700 {strides = array<i32>} : memref<2x128xf32, #tpu.memory_space<vmem>>, vector<1x128xf32>,
    %c1_246 = arith.constant 1 : index
    %c0_247 = arith.constant 0 : index
    %707 = vector.load %arg3[%c1_246, %c0_247] : memref<2x128xf32, #tpu.memory_space<vmem>>, vector<1x128xf32>
    tpu.vector_store %arg3[%c1_246, %c0_247], %705 {strides = array<i32>} : memref<2x128xf32, #tpu.memory_space<vmem>>, vector<1x128xf32>,
    return
  }
  func.func @transform_0(%arg0: i32) -> (i32, i32, i32) {
    %c0_i32 = arith.constant 0 : i32
    %c0_i32_0 = arith.constant 0 : i32
    %c0_i32_1 = arith.constant 0 : i32
    return %c0_i32, %c0_i32_0, %arg0 : i32, i32, i32
  }
  func.func @transform_1(%arg0: i32) -> (i32, i32) {
    %c0_i32 = arith.constant 0 : i32
    %c0_i32_0 = arith.constant 0 : i32
    return %c0_i32, %arg0 : i32, i32
  }
  func.func @transform_2(%arg0: i32) -> (i32, i32) {
    %c0_i32 = arith.constant 0 : i32
    %c0_i32_0 = arith.constant 0 : i32
    return %c0_i32, %arg0 : i32, i32
  }
}

</mosaic_0001>

<bundles_post_ra>
// kernel: tpu_custom_call.1
= control target key start
LH: loop header
LB: loop body
LE: loop exit
PB: predicated region body
PF: predicated region fallthrough
CT: control target
= control target key end

     0   :  { %7 = vsyncpa [#allocation3], 0  ;;  %s2315_s0 = inlined_call_operand.hbm [shape: f32[16,16,128], index: 0, kind: input, shape index: {}]   ;;  %s2316_s1 = inlined_call_operand.vmem [shape: s32[2,128], index: 1, kind: input, shape index: {}]   ;;  %s2317_s2 = inlined_call_operand.hbm [shape: f32[2,128], index: 2, kind: output, shape index: {}]  }
   0x1   :  { %8 = vsyncpa [#allocation4], 0  ;;  %s1339_s9 = smov [#allocation2]   ;;  %s1291_s13 = scalar_lea.hbm %s2315_s0, 4096 }
   0x2   :  { %s14_s10 = sshll.u32 %s1339_s9, 4  ;;  %p1292_p0 = scmp.ne.s32.totalorder %s2315_s0, %s1291_s13  ;;  %s15_s10 = int_to_ptr.vmem [resolvable:$true] %s14_s10 }
   0x3   :  { %p1295_p1 = scmp.lt.u32.totalorder %s1291_s13, %s2315_s0 }
   0x5   :  { %p1297_p2 = pnand %p1295_p1, %p1292_p0 }
   0x7   :  { %1300 = shalt.err (!%p1297_p2)
}
   0x8   :  { %s1301_s18 = scalar_lea.vmem %s15_s10, 4096  ;;  %p1306_p4 = scmp.lt.s32.totalorder %s15_s10, %s15_s10 }
   0x9   :  { %p1302_p3 = scmp.ne.s32.totalorder %s15_s10, %s1301_s18  ;;  %p1307_p5 = scmp.lt.s32.totalorder %s1301_s18, %s1301_s18 }
   0xb   :  { %p1308_p6 = por %p1307_p5, %p1306_p4 }
   0xd   :  { %p1309_p7 = pnand %p1308_p6, %p1302_p3 }
   0xf   :  { %1312 = shalt.err (!%p1309_p7)
}
  0x10   :  { %s1340_s19 = smov 128   ;;  %s1341_s20 = smov 8  }
  0x11   :  { %20 = dma.hbm_to_vmem [thread:$0]  %s2315_s0, 4096, %s15_s10, [#allocation3], %s1340_s19, %s1340_s19, %s1341_s20  }
  0x12   :  { %1335 = dma.done.wait [#allocation3], 4096  }
  0x13   :  { %1336 = vsyncadd [#allocation3], 4294963200  ;;  %v39_v0 = vld [vmem:[#allocation2] sm:$0xff]  ;;  %v40_v1 = vld [vmem:[#allocation2 + $0x8] sm:$0xff]  ;;  %v28_v21 = vlaneseq }
  0x14   :  { %v112_v2 = vld [vmem:[#allocation2 + $0x10] sm:$0xff]  ;;  %v113_v3 = vld [vmem:[#allocation2 + $0x18] sm:$0xff]  ;;  %v41_v4 = vadd.f32 %v40_v1, %v39_v0  ;;  %v1371_v6 = vld [vmem:[#allocation2 + $0x20] sm:$0xff] }
  0x15   :  { %v114_v5 = vadd.f32 %v113_v3, %v112_v2  ;;  %v1373_v7 = vld [vmem:[#allocation2 + $0x28] sm:$0xff]  ;;  %v1380_v22 = vld [vmem:[%s2316_s1] sm:$0x1]  ;;  %v1382_v25 = vld [vmem:[#allocation2 + $0x30] sm:$0xff]  ;;  %v29_v29 = vshrl.u32 %v28_v21, 7 }
  0x16   :  { %v186_v8 = vadd.f32 %v1373_v7, %v1371_v6  ;;  %v42_v9 = vrot.slane %v41_v4, 4  ;;  %v1384_v26 = vld [vmem:[#allocation2 + $0x38] sm:$0xff]  ;;  %v72_v30 = vsub.s32 0, %v1380_v22  ;;  %v144_v31 = vsub.s32 1, %v1380_v22  ;;  %v1216_v41 = vld [vmem:[%s2316_s1 + $0x1] ss:$0 sm:$0xff] }
  0x17   :  { %v115_v10 = vrot.slane %v114_v5, 4  ;;  %v258_v32 = vadd.f32 %v1384_v26, %v1382_v25  ;;  %v30_v37 = vadd.s32 8, %v29_v29  ;;  %v1405_v47 = vsub.s32 0, %v29_v29 }
  0x18   :  { %v43_v11 = vadd.f32 %v42_v9, %v41_v4  ;;  %v187_v13 = vrot.slane %v186_v8, 4  ;;  %v73_v38 = vmul.u32 %v72_v30, %v72_v30  ;;  %v145_v39 = vmul.u32 %v144_v31, %v144_v31 }
  0x19   :  { %v116_v12 = vadd.f32 %v115_v10, %v114_v5  ;;  %v259_v40 = vrot.slane %v258_v32, 4  ;;  %v35_v48 = vsub.s32 %v29_v29, %v1216_v41  ;;  %v36_v49 = vsub.s32 %v30_v37, %v1216_v41 }
  0x1a   :  { %v44_v14 = vrot.slane %v43_v11, 2  ;;  %v188_v18 = vadd.f32 %v187_v13, %v186_v8  ;;  %v74_v50 = vsub.s32 49, %v73_v38  ;;  %v146_v55 = vsub.s32 49, %v145_v39 }
  0x1b   :  { %v117_v15 = vrot.slane %v116_v12, 2  ;;  %v260_v51 = vadd.f32 %v259_v40, %v258_v32  ;;  %v1411_v57 = vmul.u32 %v35_v48, %v35_v48  ;;  %v1413_v58 = vmul.u32 %v36_v49, %v36_v49  ;;  %v1451_v32 = vld [vmem:[#allocation2 + $0x40] sm:$0xff] }
  0x1c   :  { %v45_v16 = vadd.f32 %v44_v14, %v43_v11  ;;  %v189_v27 = vrot.slane %v188_v18, 2  ;;  %v78_v59 = vrot.slane %v74_v50, %v1405_v47  ;;  %v150_v63 = vrot.slane %v146_v55, %v1405_v47 }
  0x1d   :  { %v118_v17 = vadd.f32 %v117_v15, %v116_v12  ;;  %v261_v60 = vrot.slane %v260_v51, 2  ;;  %v216_v8 = vsub.s32 2, %v1380_v22  ;;  %v1342_v9 = vmov 0.0  }
  0x1e   :  { %v46_v19 = vrot.slane %v45_v16, 1  ;;  %v190_v36 = vadd.f32 %v189_v27, %v188_v18  ;;  %vm79_vm0 = vcmp.lt.s32.totalorder %v1411_v57, %v78_v59  ;;  %vm80_vm1 = vcmp.lt.s32.totalorder %v1413_v58, %v78_v59 }
  0x1f   :  { %v119_v20 = vrot.slane %v118_v17, 1  ;;  %vm151_vm2 = vcmp.lt.s32.totalorder %v1411_v57, %v150_v63  ;;  %vm152_vm3 = vcmp.lt.s32.totalorder %v1413_v58, %v150_v63  ;;  %v97_v10 = vsel %vm79_vm0, 1.0, %v1342_v9 }
  0x20   :  { %v47_v23 = vadd.f32 %v46_v19, %v45_v16  ;;  %v191_v46 = vrot.slane %v190_v36, 1  ;;  %v98_v11 = vsel %vm80_vm1, 1.0, %v1342_v9  ;;  %v169_v12 = vsel %vm151_vm2, 1.0, %v1342_v9 }
  0x21   :  { %v120_v24 = vadd.f32 %v119_v20, %v118_v17  ;;  %v217_v17 = vmul.u32 %v216_v8, %v216_v8  ;;  %v99_v19 = vadd.f32 %v98_v11, %v97_v10  ;;  %v288_v31 = vsub.s32 3, %v1380_v22 }
  0x22   :  { %v49_v28 = vmul.f32 0.0625, %v47_v23  ;;  %v192_v56 = vadd.f32 %v191_v46, %v190_v36 }
  0x23   :  { %v121_v35 = vmul.f32 0.0625, %v120_v24  ;;  %v218_v30 = vsub.s32 49, %v217_v17  ;;  %v100_v37 = vrot.slane %v99_v19, 4  ;;  %v289_v50 = vmul.u32 %v288_v31, %v288_v31 }
  0x24   :  { %v1390_v33 = vsub.f32 %v39_v0, %v49_v28  ;;  %v1392_v34 = vsub.f32 %v40_v1, %v49_v28  ;;  %v193_v0 = vmul.f32 0.0625, %v192_v56  ;;  %v262_v1 = vadd.f32 %v261_v60, %v260_v51 }
  0x25   :  { %v1401_v44 = vsub.f32 %v112_v2, %v121_v35  ;;  %v1403_v45 = vsub.f32 %v113_v3, %v121_v35  ;;  %v1453_v35 = vld [vmem:[#allocation2 + $0x48] sm:$0xff]  ;;  %v290_v63 = vsub.s32 49, %v289_v50 }
  0x26   :  { %v52_v42 = vmul.f32 %v1390_v33, %v1390_v33  ;;  %v53_v43 = vmul.f32 %v1392_v34, %v1392_v34  ;;  %v1422_v4 = vsub.f32 %v1371_v6, %v193_v0  ;;  %v1425_v5 = vsub.f32 %v1373_v7, %v193_v0 }
  0x27   :  { %v124_v53 = vmul.f32 %v1401_v44, %v1401_v44  ;;  %v125_v54 = vmul.f32 %v1403_v45, %v1403_v45  ;;  %v170_v6 = vsel %vm152_vm3, 1.0, %v1342_v9  ;;  %v263_v7 = vrot.slane %v262_v1, 1 }
  0x28   :  { %v54_v52 = vadd.f32 %v53_v43, %v52_v42  ;;  %v196_v15 = vmul.f32 %v1422_v4, %v1422_v4  ;;  %v197_v16 = vmul.f32 %v1425_v5, %v1425_v5  ;;  %v171_v20 = vadd.f32 %v170_v6, %v169_v12 }
  0x29   :  { %v126_v62 = vadd.f32 %v125_v54, %v124_v53  ;;  %v264_v18 = vadd.f32 %v263_v7, %v262_v1  ;;  %v81_v21 = vsel %vm79_vm0, %v1390_v33, 0.0  ;;  %v82_v23 = vsel %vm80_vm1, %v1392_v34, 0.0 }
  0x2a   :  { %v55_v61 = vrot.slane %v54_v52, 4  ;;  %v198_v29 = vadd.f32 %v197_v16, %v196_v15  ;;  %v83_v36 = vadd.f32 %v82_v23, %v81_v21  ;;  %v172_v38 = vrot.slane %v171_v20, 4 }
  0x2b   :  { %v127_v3 = vrot.slane %v126_v62, 4  ;;  %v265_v28 = vmul.f32 0.0625, %v264_v18  ;;  %v90_v39 = vadd.f32 %v1392_v34, %v1390_v33  ;;  %v153_v40 = vsel %vm151_vm2, %v1401_v44, 0.0  ;;  %v1487_v18 = vld [vmem:[#allocation2 + $0x50] sm:$0xff] }
  0x2c   :  { %v56_v2 = vadd.f32 %v55_v61, %v54_v52  ;;  %v154_v48 = vsel %vm152_vm3, %v1403_v45, 0.0  ;;  %v330_v49 = vadd.f32 %v1453_v35, %v1451_v32  ;;  %v199_v33 = vrot.slane %v198_v29, 4 }
  0x2d   :  { %v128_v14 = vadd.f32 %v127_v3, %v126_v62  ;;  %v1461_v41 = vsub.f32 %v1382_v25, %v265_v28  ;;  %v1464_v42 = vsub.f32 %v1384_v26, %v265_v28  ;;  %v222_v34 = vrot.slane %v218_v30, %v1405_v47 }
  0x2e   :  { %v57_v13 = vrot.slane %v56_v2, 2  ;;  %v84_v51 = vrot.slane %v83_v36, 4  ;;  %v101_v52 = vadd.f32 %v100_v37, %v99_v19  ;;  %v173_v25 = vadd.f32 %v172_v38, %v171_v20  ;;  %v1489_v19 = vld [vmem:[#allocation2 + $0x58] sm:$0xff] }
  0x2f   :  { %v129_v27 = vrot.slane %v128_v14, 2  ;;  %v91_v53 = vrot.slane %v90_v39, 4  ;;  %v155_v54 = vadd.f32 %v154_v48, %v153_v40  ;;  %v268_v26 = vmul.f32 %v1461_v41, %v1461_v41 }
  0x30   :  { %v58_v24 = vadd.f32 %v57_v13, %v56_v2  ;;  %v269_v55 = vmul.f32 %v1464_v42, %v1464_v42  ;;  %v162_v60 = vadd.f32 %v1403_v45, %v1401_v44  ;;  %v331_v61 = vrot.slane %v330_v49, 4 }
  0x31   :  { %v130_v46 = vadd.f32 %v129_v27, %v128_v14  ;;  %v200_v62 = vadd.f32 %v199_v33, %v198_v29  ;;  %vm223_vm4 = vcmp.lt.s32.totalorder %v1411_v57, %v222_v34  ;;  %v85_v0 = vadd.f32 %v84_v51, %v83_v36 }
  0x32   :  { %v59_v43 = vrot.slane %v58_v24, 1  ;;  %v102_v1 = vrot.slane %v101_v52, 2  ;;  %v174_v2 = vrot.slane %v173_v25, 2  ;;  %vm224_vm5 = vcmp.lt.s32.totalorder %v1413_v58, %v222_v34 }
  0x33   :  { %v131_v59 = vrot.slane %v130_v46, 1  ;;  %v92_v3 = vadd.f32 %v91_v53, %v90_v39  ;;  %v156_v8 = vrot.slane %v155_v54, 4  ;;  %v270_v10 = vadd.f32 %v269_v55, %v268_v26 }
  0x34   :  { %v60_v56 = vadd.f32 %v59_v43, %v58_v24  ;;  %v332_v11 = vadd.f32 %v331_v61, %v330_v49  ;;  %v163_v7 = vrot.slane %v162_v60, 4  ;;  %v201_v13 = vrot.slane %v200_v62, 2 }
  0x35   :  { %v132_v6 = vadd.f32 %v131_v59, %v130_v46  ;;  %v241_v44 = vsel %vm223_vm4, 1.0, %v1342_v9  ;;  %v242_v45 = vsel %vm224_vm5, 1.0, %v1342_v9  ;;  %v86_v14 = vrot.slane %v85_v0, 2  ;;  %v1507_v59 = vld [vmem:[#allocation2 + $0x60] sm:$0xff] }
  0x36   :  { %v61_v12 = vmul.f32 0.0625, %v60_v56  ;;  %v103_v15 = vadd.f32 %v102_v1, %v101_v52  ;;  %v175_v16 = vadd.f32 %v174_v2, %v173_v25  ;;  %v294_v17 = vrot.slane %v290_v63, %v1405_v47 }
  0x37   :  { %v93_v20 = vrot.slane %v92_v3, 2  ;;  %v157_v21 = vadd.f32 %v156_v8, %v155_v54  ;;  %v271_v23 = vrot.slane %v270_v10, 4  ;;  %v333_v24 = vrot.slane %v332_v11, 2 }
  0x38   :  { %v1491_v27 = vadd.f32 1e-06, %v61_v12  ;;  %v133_v28 = vmul.f32 0.0625, %v132_v6  ;;  %v164_v29 = vadd.f32 %v163_v7, %v162_v60  ;;  %v243_v30 = vadd.f32 %v242_v45, %v241_v44  ;;  %v1509_v60 = vld [vmem:[#allocation2 + $0x68] sm:$0xff] }
  0x39   :  { %v202_v31 = vadd.f32 %v201_v13, %v200_v62  ;;  %v402_v36 = vadd.f32 %v1489_v19, %v1487_v18  ;;  %v87_v37 = vadd.f32 %v86_v14, %v85_v0  ;;  %v104_v38 = vrot.slane %v103_v15, 1 }
  0x3a   :  { %v176_v39 = vrot.slane %v175_v16, 1  ;;  %vm295_vm6 = vcmp.lt.s32.totalorder %v1411_v57, %v294_v17  ;;  %v94_v40 = vadd.f32 %v93_v20, %v92_v3  ;;  %v158_v43 = vrot.slane %v157_v21, 2 }
  0x3b   :  { %v272_v46 = vadd.f32 %v271_v23, %v270_v10  ;;  %v334_v48 = vadd.f32 %v333_v24, %v332_v11  ;;  %1222 = vrsqrt.f32 %v1491_v27  ;;  %v1497_v49 = vadd.f32 1e-06, %v133_v28 }
  0x3c   :  { %v165_v33 = vrot.slane %v164_v29, 2  ;;  %v244_v50 = vrot.slane %v243_v30, 4  ;;  %v203_v51 = vrot.slane %v202_v31, 1  ;;  %v225_v52 = vsel %vm223_vm4, %v1422_v4, 0.0 }
  0x3d   :  { %v226_v25 = vsel %vm224_vm5, %v1425_v5, 0.0  ;;  %v403_v53 = vrot.slane %v402_v36, 4  ;;  %v88_v54 = vrot.slane %v87_v37, 1  ;;  %v105_v26 = vadd.f32 %v104_v38, %v103_v15 }
  0x3e   :  { %v177_v55 = vadd.f32 %v176_v39, %v175_v16  ;;  %v234_v56 = vadd.f32 %v1425_v5, %v1422_v4  ;;  %v95_v61 = vrot.slane %v94_v40, 1  ;;  %v1511_v62 = vadd.f32 %v158_v43, %v157_v21 }
  0x3f   :  { %v273_v63 = vrot.slane %v272_v46, 2  ;;  %v335_v0 = vrot.slane %v334_v48, 1  ;;  %1224 = vrsqrt.f32 %v1497_v49  ;;  %v227_v34 = vadd.f32 %v226_v25, %v225_v52 }
  0x40   :  { %vm296_vm7 = vcmp.lt.s32.totalorder %v1413_v58, %v294_v17  ;;  %v404_v1 = vadd.f32 %v403_v53, %v402_v36  ;;  %v1515_v2 = vadd.f32 %v165_v33, %v164_v29  ;;  %v204_v3 = vadd.f32 %v203_v51, %v202_v31 }
  0x41   :  { %v360_v4 = vsub.s32 4, %v1380_v22  ;;  %v474_v5 = vadd.f32 %v1509_v60, %v1507_v59  ;;  %v1520_v8 = vadd.f32 %v88_v54, %v87_v37  ;;  %v1522_v10 = vadd.f32 %v177_v55, %v105_v26 }
  0x42   :  { %v235_v11 = vrot.slane %v234_v56, 4  ;;  %v245_v12 = vadd.f32 %v244_v50, %v243_v30  ;;  %v274_v6 = vadd.f32 %v273_v63, %v272_v46  ;;  %v313_v7 = vsel %vm295_vm6, 1.0, %v1342_v9 }
  0x43   :  { %v314_v13 = vsel %vm296_vm7, 1.0, %v1342_v9  ;;  %v336_v44 = vadd.f32 %v335_v0, %v334_v48  ;;  %v1530_v45 = vadd.f32 %v95_v61, %v94_v40  ;;  %v160_v14 = vrot.slane %v1511_v62, 1 }
  0x44   :  { %v228_v15 = vrot.slane %v227_v34, 4  ;;  %v405_v16 = vrot.slane %v404_v1, 2  ;;  %v205_v20 = vmul.f32 0.0625, %v204_v3  ;;  %v297_v21 = vsel %vm295_vm6, %v1461_v41, 0.0 }
  0x45   :  { %v298_v23 = vsel %vm296_vm7, %v1464_v42, 0.0  ;;  %v475_v24 = vrot.slane %v474_v5, 4  ;;  %v1223_v28 = vpop.eup %1222  ;;  %v167_v29 = vrot.slane %v1515_v2, 1  ;;  %v236_v30 = vadd.f32 %v235_v11, %v234_v56 }
  0x46   :  { %v315_v31 = vadd.f32 %v314_v13, %v313_v7  ;;  %v361_v36 = vmul.u32 %v360_v4, %v360_v4  ;;  %vm65_vm8 = vcmp.eq.f32.partialorder %v1491_v27, inf  ;;  %v246_v37 = vrot.slane %v245_v12, 2 }
  0x47   :  { %v275_v38 = vrot.slane %v274_v6, 1  ;;  %v337_v39 = vmul.f32 0.0625, %v336_v44  ;;  %vm67_vm9 = vcmp.eq.f32.partialorder %v1491_v27, 0.0  ;;  %v68_v40 = vand.u32 2147483648, %v1491_v27 }
  0x48   :  { %v299_v43 = vadd.f32 %v298_v23, %v297_v21  ;;  %v406_v46 = vadd.f32 %v405_v16, %v404_v1  ;;  %v64_v17 = vmul.f32 %v1223_v28, %v1491_v27  ;;  %v1544_v48 = vadd.f32 1e-06, %v205_v20 }
  0x49   :  { %v229_v33 = vadd.f32 %v228_v15, %v227_v34  ;;  %v476_v50 = vadd.f32 %v475_v24, %v474_v5  ;;  %v1225_v51 = vpop.eup %1224  ;;  %v306_v52 = vadd.f32 %v1464_v42, %v1461_v41  ;;  %v316_v25 = vrot.slane %v315_v31, 4 }
  0x4a   :  { %v362_v53 = vsub.s32 49, %v361_v36  ;;  %v407_v54 = vrot.slane %v406_v46, 1  ;;  %v237_v26 = vrot.slane %v236_v30, 2  ;;  %v276_v55 = vadd.f32 %v275_v38, %v274_v6 }
  0x4b   :  { %v1549_v56 = vsub.f32 %v1451_v32, %v337_v39  ;;  %v1552_v61 = vsub.f32 %v1453_v35, %v337_v39  ;;  %vm137_vm10 = vcmp.eq.f32.partialorder %v1497_v49, inf  ;;  %v247_v63 = vadd.f32 %v246_v37, %v245_v12 }
  0x4c   :  { %v300_v0 = vrot.slane %v299_v43, 4  ;;  %v408_v34 = vadd.f32 %v407_v54, %v406_v46  ;;  %v66_v41 = vsel %vm65_vm8, %v1491_v27, %v64_v17  ;;  %v136_v42 = vmul.f32 %v1225_v51, %v1497_v49 }
  0x4d   :  { %1226 = vrsqrt.f32 %v1544_v48  ;;  %v477_v1 = vrot.slane %v476_v50, 2  ;;  %v307_v3 = vrot.slane %v306_v52, 4  ;;  %v317_v32 = vadd.f32 %v316_v25, %v315_v31 }
  0x4e   :  { %v1561_v4 = vrot.slane %v362_v53, %v1405_v47  ;;  %v409_v35 = vmul.f32 0.0625, %v408_v34  ;;  %vm139_vm11 = vcmp.eq.f32.partialorder %v1497_v49, 0.0  ;;  %v277_v5 = vmul.f32 0.0625, %v276_v55 }
  0x4f   :  { %v340_v11 = vmul.f32 %v1549_v56, %v1549_v56  ;;  %v341_v12 = vmul.f32 %v1552_v61, %v1552_v61  ;;  %v69_v6 = vsel %vm67_vm9, %v68_v40, %v66_v41  ;;  %v140_v7 = vand.u32 2147483648, %v1497_v49 }
  0x50   :  { %v230_v13 = vrot.slane %v229_v33, 2  ;;  %v301_v44 = vadd.f32 %v300_v0, %v299_v43  ;;  %v138_v15 = vsel %vm137_vm10, %v1497_v49, %v136_v42  ;;  %v1575_v16 = vsub.f32 %v1487_v18, %v409_v35 }
  0x51   :  { %v1578_v20 = vsub.f32 %v1489_v19, %v409_v35  ;;  %v478_v21 = vadd.f32 %v477_v1, %v476_v50  ;;  %v308_v23 = vadd.f32 %v307_v3, %v306_v52  ;;  %v318_v24 = vrot.slane %v317_v32, 2  ;;  %v1616_v35 = vld [vmem:[#allocation2 + $0x70] sm:$0xff] }
  0x52   :  { %vm367_vm12 = vcmp.lt.s32.totalorder %v1411_v57, %v1561_v4  ;;  %vm368_vm13 = vcmp.lt.s32.totalorder %v1413_v58, %v1561_v4  ;;  %v238_v27 = vadd.f32 %v237_v26, %v236_v30  ;;  %v248_v28 = vrot.slane %v247_v63, 1 }
  0x53   :  { %v1584_v31 = vadd.f32 1e-06, %v277_v5  ;;  %v342_v36 = vadd.f32 %v341_v12, %v340_v11  ;;  %v70_v37 = vadd.f32 1e-06, %v69_v6  ;;  %v141_v18 = vsel %vm139_vm11, %v140_v7, %v138_v15  ;;  %v1618_v5 = vld [vmem:[#allocation2 + $0x78] sm:$0xff] }
  0x54   :  { %v412_v19 = vmul.f32 %v1575_v16, %v1575_v16  ;;  %v413_v38 = vmul.f32 %v1578_v20, %v1578_v20  ;;  %v302_v39 = vrot.slane %v301_v44, 2  ;;  %v385_v30 = vsel %vm367_vm12, 1.0, %v1342_v9 }
  0x55   :  { %v386_v40 = vsel %vm368_vm13, 1.0, %v1342_v9  ;;  %v479_v43 = vrot.slane %v478_v21, 1  ;;  %v1603_v49 = vadd.f32 %v160_v14, %v1511_v62  ;;  %v231_v46 = vadd.f32 %v230_v13, %v229_v33 }
  0x56   :  { %v309_v17 = vrot.slane %v308_v23, 2  ;;  %v319_v50 = vadd.f32 %v318_v24, %v317_v32  ;;  %v142_v52 = vadd.f32 1e-06, %v141_v18  ;;  %1228 = vrsqrt.f32 %v1584_v31 }
  0x57   :  { %v1227_v51 = vpop.eup %1226  ;;  %v343_v25 = vrot.slane %v342_v36, 4  ;;  %v480_v53 = vadd.f32 %v479_v43, %v478_v21  ;;  %v1609_v54 = vadd.f32 %v167_v29, %v1515_v2  ;;  %v249_v26 = vadd.f32 %v248_v28, %v247_v63 }
  0x58   :  { %v387_v55 = vadd.f32 %v386_v40, %v385_v30  ;;  %v414_v0 = vadd.f32 %v413_v38, %v412_v19  ;;  %1230 = vrcp.f32 %v70_v37  ;;  %v239_v62 = vrot.slane %v238_v27, 1 }
  0x59   :  { %v303_v14 = vadd.f32 %v302_v39, %v301_v44  ;;  %v481_v33 = vmul.f32 0.0625, %v480_v53  ;;  %v208_v34 = vmul.f32 %v1227_v51, %v1544_v48  ;;  %v310_v41 = vadd.f32 %v309_v17, %v308_v23 }
  0x5a   :  { %v320_v42 = vrot.slane %v319_v50, 1  ;;  %v432_v1 = vsub.s32 5, %v1380_v22  ;;  %1232 = vrcp.f32 %v142_v52  ;;  %vm209_vm14 = vcmp.eq.f32.partialorder %v1544_v48, inf  ;;  %v1659_v52 = vld [vmem:[#allocation2 + $0x88] sm:$0xff] }
  0x5b   :  { %v232_v3 = vrot.slane %v231_v46, 1  ;;  %v344_v32 = vadd.f32 %v343_v25, %v342_v36  ;;  %vm211_vm15 = vcmp.eq.f32.partialorder %v1544_v48, 0.0  ;;  %v254_v2 = vadd.f32 %v249_v26, %v1522_v10 }
  0x5c   :  { %v388_v29 = vrot.slane %v387_v55, 4  ;;  %v415_v63 = vrot.slane %v414_v0, 4  ;;  %v212_v11 = vand.u32 2147483648, %v1544_v48  ;;  %v304_v12 = vrot.slane %v303_v14, 1 }
  0x5d   :  { %v1622_v6 = vsub.f32 %v1507_v59, %v481_v33  ;;  %v1625_v7 = vsub.f32 %v1509_v60, %v481_v33  ;;  %v210_v13 = vsel %vm209_vm14, %v1544_v48, %v208_v34  ;;  %v311_v44 = vrot.slane %v310_v41, 1 }
  0x5e   :  { %v321_v15 = vadd.f32 %v320_v42, %v319_v50  ;;  %v433_v10 = vmul.u32 %v432_v1, %v432_v1  ;;  %v345_v21 = vrot.slane %v344_v32, 2  ;;  %v369_v23 = vsel %vm367_vm12, %v1549_v56, 0.0 }
  0x5f   :  { %v370_v59 = vsel %vm368_vm13, %v1552_v61, 0.0  ;;  %v546_v60 = vadd.f32 %v1618_v5, %v1616_v35  ;;  %v1638_v24 = vadd.f32 %v232_v3, %v231_v46  ;;  %v1640_v28 = vadd.f32 %v239_v62, %v238_v27 }
  0x60   :  { %v389_v36 = vadd.f32 %v388_v29, %v387_v55  ;;  %v416_v37 = vadd.f32 %v415_v63, %v414_v0  ;;  %v1229_v18 = vpop.eup %1228  ;;  %v1642_v19 = vadd.f32 %v304_v12, %v303_v14  ;;  %v378_v38 = vadd.f32 %v1552_v61, %v1549_v56  ;;  %v1657_v61 = vld [vmem:[#allocation2 + $0x80] sm:$0xff] }
  0x61   :  { %v484_v39 = vmul.f32 %v1622_v6, %v1622_v6  ;;  %v485_v4 = vmul.f32 %v1625_v7, %v1625_v7  ;;  %v213_v30 = vsel %vm211_vm15, %v212_v11, %v210_v13  ;;  %v1652_v40 = vadd.f32 %v311_v44, %v310_v41 }
  0x62   :  { %v371_v27 = vadd.f32 %v370_v59, %v369_v23  ;;  %v434_v43 = vsub.s32 49, %v433_v10  ;;  %v1231_v46 = vpop.eup %1230  ;;  %v1654_v17 = vadd.f32 %v321_v15, %v254_v2  ;;  %v346_v50 = vadd.f32 %v345_v21, %v344_v32 }
  0x63   :  { %v504_v51 = vsub.s32 6, %v1380_v22  ;;  %v547_v56 = vrot.slane %v546_v60, 4  ;;  %v280_v25 = vmul.f32 %v1229_v18, %v1584_v31  ;;  %vm281_vm0 = vcmp.eq.f32.partialorder %v1584_v31, inf }
  0x64   :  { %v390_v48 = vrot.slane %v389_v36, 2  ;;  %v417_v53 = vrot.slane %v416_v37, 2  ;;  %v1233_v26 = vpop.eup %1232  ;;  %v214_v55 = vadd.f32 1e-06, %v213_v30  ;;  %vm283_vm1 = vcmp.eq.f32.partialorder %v1584_v31, 0.0 }
  0x65   :  { %v379_v0 = vrot.slane %v378_v38, 4  ;;  %v486_v62 = vadd.f32 %v485_v4, %v484_v39  ;;  %v372_v14 = vrot.slane %v371_v27, 4  ;;  %v438_v33 = vrot.slane %v434_v43, %v1405_v47 }
  0x66   :  { %v548_v34 = vadd.f32 %v547_v56, %v546_v60  ;;  %v618_v41 = vadd.f32 %v1659_v52, %v1657_v61  ;;  %v106_v42 = vmul.f32 %v1231_v46, %v1520_v8  ;;  %v108_v1 = vmul.f32 %v1231_v46, %v1530_v45 }
  0x67   :  { %v284_v3 = vand.u32 2147483648, %v1584_v31  ;;  %v347_v32 = vrot.slane %v346_v50, 1  ;;  %v178_v2 = vmul.f32 %v1233_v26, %v1603_v49  ;;  %v282_v29 = vsel %vm281_vm0, %v1584_v31, %v280_v25 }
  0x68   :  { %v391_v63 = vadd.f32 %v390_v48, %v389_v36  ;;  %v418_v11 = vadd.f32 %v417_v53, %v416_v37  ;;  %1234 = vrcp.f32 %v214_v55  ;;  %v380_v12 = vadd.f32 %v379_v0, %v378_v38 }
  0x69   :  { %v487_v13 = vrot.slane %v486_v62, 4  ;;  %v549_v44 = vrot.slane %v548_v34, 2  ;;  %v373_v15 = vadd.f32 %v372_v14, %v371_v27  ;;  %vm439_vm2 = vcmp.lt.s32.totalorder %v1411_v57, %v438_v33 }
  0x6a   :  { %vm440_vm3 = vcmp.lt.s32.totalorder %v1413_v58, %v438_v33  ;;  %v619_v8 = vrot.slane %v618_v41, 4  ;;  %v285_v45 = vsel %vm283_vm1, %v284_v3, %v282_v29  ;;  %v348_v49 = vadd.f32 %v347_v32, %v346_v50 }
  0x6b   :  { %v505_v10 = vmul.u32 %v504_v51, %v504_v51  ;;  %v550_v21 = vadd.f32 %v549_v44, %v548_v34  ;;  %v180_v23 = vmul.f32 %v1233_v26, %v1609_v54  ;;  %v392_v59 = vrot.slane %v391_v63, 1 }
  0x6c   :  { %v419_v60 = vrot.slane %v418_v11, 1  ;;  %v620_v36 = vadd.f32 %v619_v8, %v618_v41  ;;  %v457_v37 = vsel %vm439_vm2, 1.0, %v1342_v9  ;;  %v458_v18 = vsel %vm440_vm3, 1.0, %v1342_v9 }
  0x6d   :  { %v488_v38 = vadd.f32 %v487_v13, %v486_v62  ;;  %v551_v39 = vrot.slane %v550_v21, 1  ;;  %v179_v31 = vadd.f32 %v178_v2, %v106_v42  ;;  %v286_v4 = vadd.f32 1e-06, %v285_v45 }
  0x6e   :  { %v374_v30 = vrot.slane %v373_v15, 2  ;;  %v381_v27 = vrot.slane %v380_v12, 2  ;;  %v349_v43 = vmul.f32 0.0625, %v348_v49  ;;  %v441_v54 = vsel %vm439_vm2, %v1575_v16, 0.0 }
  0x6f   :  { %v442_v46 = vsel %vm440_vm3, %v1578_v20, 0.0  ;;  %v552_v50 = vadd.f32 %v551_v39, %v550_v21  ;;  %v420_v51 = vadd.f32 %v419_v60, %v418_v11  ;;  %v450_v56 = vadd.f32 %v1578_v20, %v1575_v16  ;;  %v1715_v21 = vld [vmem:[#allocation2 + $0x98] sm:$0xff] }
  0x70   :  { %v459_v25 = vadd.f32 %v458_v18, %v457_v37  ;;  %v621_v48 = vrot.slane %v620_v36, 2  ;;  %v393_v53 = vadd.f32 %v392_v59, %v391_v63  ;;  %v489_v26 = vrot.slane %v488_v38, 2 }
  0x71   :  { %v506_v55 = vsub.s32 49, %v505_v10  ;;  %v553_v0 = vmul.f32 0.0625, %v552_v50  ;;  %1236 = vrcp.f32 %v286_v4  ;;  %v375_v62 = vadd.f32 %v374_v30, %v373_v15  ;;  %v1713_v10 = vld [vmem:[#allocation2 + $0x90] sm:$0xff] }
  0x72   :  { %v382_v14 = vadd.f32 %v381_v27, %v380_v12  ;;  %v443_v34 = vadd.f32 %v442_v46, %v441_v54  ;;  %v1235_v41 = vpop.eup %1234  ;;  %v1693_v42 = vadd.f32 1e-06, %v349_v43  ;;  %v576_v16 = vsub.s32 7, %v1380_v22 }
  0x73   :  { %v1696_v33 = vsub.f32 %v1616_v35, %v553_v0  ;;  %v1699_v3 = vsub.f32 %v1618_v5, %v553_v0  ;;  %v421_v20 = vmul.f32 0.0625, %v420_v51  ;;  %v451_v32 = vrot.slane %v450_v56, 4 }
  0x74   :  { %v460_v2 = vrot.slane %v459_v25, 4  ;;  %v622_v29 = vadd.f32 %v621_v48, %v620_v36  ;;  %v490_v63 = vadd.f32 %v489_v26, %v488_v38  ;;  %v510_v11 = vrot.slane %v506_v55, %v1405_v47 }
  0x75   :  { %v556_v12 = vmul.f32 %v1696_v33, %v1696_v33  ;;  %v557_v13 = vmul.f32 %v1699_v3, %v1699_v3  ;;  %v181_v35 = vadd.f32 %v180_v23, %v108_v1  ;;  %v250_v44 = vmul.f32 %v1235_v41, %v1638_v24 }
  0x76   :  { %v1709_v5 = vadd.f32 %v393_v53, %v1654_v17  ;;  %v444_v15 = vrot.slane %v443_v34, 4  ;;  %v252_v8 = vmul.f32 %v1235_v41, %v1640_v28  ;;  %1238 = vrsqrt.f32 %v1693_v42 }
  0x77   :  { %v376_v45 = vrot.slane %v375_v62, 1  ;;  %v577_v49 = vmul.u32 %v576_v16, %v576_v16  ;;  %v383_v59 = vrot.slane %v382_v14, 1  ;;  %v1717_v60 = vadd.f32 1e-06, %v421_v20 }
  0x78   :  { %v461_v1 = vadd.f32 %v460_v2, %v459_v25  ;;  %v623_v23 = vrot.slane %v622_v29, 1  ;;  %v452_v24 = vadd.f32 %v451_v32, %v450_v56  ;;  %v491_v36 = vrot.slane %v490_v63, 1 }
  0x79   :  { %vm511_vm4 = vcmp.lt.s32.totalorder %v1411_v57, %v510_v11  ;;  %v558_v17 = vadd.f32 %v557_v13, %v556_v12  ;;  %v445_v37 = vadd.f32 %v444_v15, %v443_v34  ;;  %vm512_vm5 = vcmp.lt.s32.totalorder %v1413_v58, %v510_v11 }
  0x7a   :  { %v624_v28 = vadd.f32 %v623_v23, %v622_v29  ;;  %v690_v18 = vadd.f32 %v1715_v21, %v1713_v10  ;;  %v251_v38 = vadd.f32 %v250_v44, %v179_v31  ;;  %v253_v39 = vadd.f32 %v252_v8, %v181_v35 }
  0x7b   :  { %v1723_v4 = vadd.f32 %v376_v45, %v375_v62  ;;  %v578_v30 = vsub.s32 49, %v577_v49  ;;  %v1237_v27 = vpop.eup %1236  ;;  %v1725_v43 = vadd.f32 %v383_v59, %v382_v14  ;;  %1240 = vrsqrt.f32 %v1717_v60 }
  0x7c   :  { %v462_v54 = vrot.slane %v461_v1, 2  ;;  %v625_v46 = vmul.f32 0.0625, %v624_v28  ;;  %vm353_vm6 = vcmp.eq.f32.partialorder %v1693_v42, inf  ;;  %v492_v50 = vadd.f32 %v491_v36, %v490_v63 }
  0x7d   :  { %v529_v51 = vsel %vm511_vm4, 1.0, %v1342_v9  ;;  %v530_v31 = vsel %vm512_vm5, 1.0, %v1342_v9  ;;  %v559_v56 = vrot.slane %v558_v17, 4  ;;  %v446_v25 = vrot.slane %v445_v37, 2 }
  0x7e   :  { %v453_v48 = vrot.slane %v452_v24, 2  ;;  %v513_v53 = vsel %vm511_vm4, %v1622_v6, 0.0  ;;  %v691_v26 = vrot.slane %v690_v18, 4  ;;  %v514_v55 = vsel %vm512_vm5, %v1625_v7, 0.0 }
  0x7f   :  { %v582_v0 = vrot.slane %v578_v30, %v1405_v47  ;;  %v1743_v62 = vsub.f32 %v1657_v61, %v625_v46  ;;  %v1746_v14 = vsub.f32 %v1659_v52, %v625_v46  ;;  %v322_v34 = vmul.f32 %v1237_v27, %v1642_v19 }
  0x80   :  { %vm355_vm7 = vcmp.eq.f32.partialorder %v1693_v42, 0.0  ;;  %v463_v41 = vadd.f32 %v462_v54, %v461_v1  ;;  %v531_v16 = vadd.f32 %v530_v31, %v529_v51  ;;  %v1239_v20 = vpop.eup %1238  ;;  %v324_v32 = vmul.f32 %v1237_v27, %v1652_v40 }
  0x81   :  { %v493_v2 = vmul.f32 0.0625, %v492_v50  ;;  %v522_v29 = vadd.f32 %v1625_v7, %v1622_v6  ;;  %v560_v63 = vadd.f32 %v559_v56, %v558_v17  ;;  %v1753_v11 = vadd.f32 %v446_v25, %v445_v37 }
  0x82   :  { %v1755_v61 = vadd.f32 %v453_v48, %v452_v24  ;;  %v515_v52 = vadd.f32 %v514_v55, %v513_v53  ;;  %v692_v12 = vadd.f32 %v691_v26, %v690_v18  ;;  %vm583_vm8 = vcmp.lt.s32.totalorder %v1411_v57, %v582_v0  ;;  %v1790_v48 = vld [vmem:[#allocation2 + $0xa0] sm:$0xff]  ;;  %v1792_v53 = vld [vmem:[#allocation2 + $0xa8] sm:$0xff] }
  0x83   :  { %vm584_vm9 = vcmp.lt.s32.totalorder %v1413_v58, %v582_v0  ;;  %v628_v19 = vmul.f32 %v1743_v62, %v1743_v62  ;;  %v629_v40 = vmul.f32 %v1746_v14, %v1746_v14  ;;  %v352_v13 = vmul.f32 %v1239_v20, %v1693_v42 }
  0x84   :  { %v356_v6 = vand.u32 2147483648, %v1693_v42  ;;  %v464_v7 = vrot.slane %v463_v41, 1  ;;  %v532_v35 = vrot.slane %v531_v16, 4  ;;  %v1765_v44 = vadd.f32 %v322_v34, %v251_v38 }
  0x85   :  { %v1767_v15 = vadd.f32 1e-06, %v493_v2  ;;  %v523_v8 = vrot.slane %v522_v29, 4  ;;  %v561_v45 = vrot.slane %v560_v63, 2  ;;  %v1241_v49 = vpop.eup %1240  ;;  %v516_v59 = vrot.slane %v515_v52, 4 }
  0x86   :  { %v601_v1 = vsel %vm583_vm8, 1.0, %v1342_v9  ;;  %v602_v23 = vsel %vm584_vm9, 1.0, %v1342_v9  ;;  %v693_v24 = vrot.slane %v692_v12, 2  ;;  %v1775_v36 = vadd.f32 %v324_v32, %v253_v39 }
  0x87   :  { %v448_v17 = vrot.slane %v1753_v11, 1  ;;  %v455_v37 = vrot.slane %v1755_v61, 1  ;;  %v630_v28 = vadd.f32 %v629_v40, %v628_v19  ;;  %v354_v18 = vsel %vm353_vm6, %v1693_v42, %v352_v13 }
  0x88   :  { %v533_v38 = vadd.f32 %v532_v35, %v531_v16  ;;  %v648_v30 = vsub.s32 8, %v1380_v22  ;;  %v694_v27 = vadd.f32 %v693_v24, %v692_v12  ;;  %v424_v54 = vmul.f32 %v1241_v49, %v1717_v60 }
  0x89   :  { %1242 = vrsqrt.f32 %v1767_v15  ;;  %v562_v46 = vadd.f32 %v561_v45, %v560_v63  ;;  %v603_v39 = vadd.f32 %v602_v23, %v601_v1  ;;  %vm425_vm10 = vcmp.eq.f32.partialorder %v1717_v60, inf }
  0x8a   :  { %vm427_vm11 = vcmp.eq.f32.partialorder %v1717_v60, 0.0  ;;  %v517_v50 = vadd.f32 %v516_v59, %v515_v52  ;;  %v524_v51 = vadd.f32 %v523_v8, %v522_v29  ;;  %v357_v31 = vsel %vm355_vm7, %v356_v6, %v354_v18 }
  0x8b   :  { %v428_v56 = vand.u32 2147483648, %v1717_v60  ;;  %v631_v25 = vrot.slane %v630_v28, 4  ;;  %v695_v22 = vrot.slane %v694_v27, 1  ;;  %v534_v26 = vrot.slane %v533_v38, 2 }
  0x8c   :  { %v585_v55 = vsel %vm583_vm8, %v1696_v33, 0.0  ;;  %v586_v34 = vsel %vm584_vm9, %v1699_v3, 0.0  ;;  %v649_v16 = vmul.u32 %v648_v30, %v648_v30  ;;  %v426_v42 = vsel %vm425_vm10, %v1717_v60, %v424_v54 }
  0x8d   :  { %v563_v20 = vrot.slane %v562_v46, 1  ;;  %v604_v32 = vrot.slane %v603_v39, 4  ;;  %v696_v2 = vadd.f32 %v695_v22, %v694_v27  ;;  %v358_v29 = vadd.f32 1e-06, %v357_v31 }
  0x8e   :  { %v465_v63 = vadd.f32 %v464_v7, %v463_v41  ;;  %v518_v52 = vrot.slane %v517_v50, 2  ;;  %v762_v12 = vadd.f32 %v1792_v53, %v1790_v48  ;;  %v525_v19 = vrot.slane %v524_v51, 2 }
  0x8f   :  { %v587_v40 = vadd.f32 %v586_v34, %v585_v55  ;;  %v632_v13 = vadd.f32 %v631_v25, %v630_v28  ;;  %v697_v6 = vmul.f32 0.0625, %v696_v2  ;;  %v429_v0 = vsel %vm427_vm11, %v428_v56, %v426_v42 }
  0x90   :  { %v535_v35 = vadd.f32 %v534_v26, %v533_v38  ;;  %v594_v8 = vadd.f32 %v1699_v3, %v1696_v33  ;;  %v650_v45 = vsub.s32 49, %v649_v16  ;;  %v1808_v49 = vadd.f32 %v448_v17, %v1753_v11 }
  0x91   :  { %v1811_v41 = vadd.f32 %v455_v37, %v1755_v61  ;;  %v564_v7 = vadd.f32 %v563_v20, %v562_v46  ;;  %v605_v59 = vadd.f32 %v604_v32, %v603_v39  ;;  %1244 = vrcp.f32 %v358_v29 }
  0x92   :  { %v1814_v1 = vsub.f32 %v1713_v10, %v697_v6  ;;  %v1817_v60 = vsub.f32 %v1715_v21, %v697_v6  ;;  %v763_v23 = vrot.slane %v762_v12, 4  ;;  %v430_v28 = vadd.f32 1e-06, %v429_v0  ;;  %v1824_v10 = vld [vmem:[%s2316_s1] sm:$0x1]  ;;  %s1343_s1 = smov [#allocation5]  }
  0x93   :  { %v1243_v24 = vpop.eup %1242  ;;  %v519_v33 = vadd.f32 %v518_v52, %v517_v50  ;;  %v588_v3 = vrot.slane %v587_v40, 4  ;;  %v633_v18 = vrot.slane %v632_v13, 2  ;;  %v526_v11 = vadd.f32 %v525_v19, %v524_v51  ;;  %s1207_s28 = sshll.u32 %s1343_s1, 4  ;;  %s1208_s28 = int_to_ptr.vmem [resolvable:$true] %s1207_s28 }
  0x94   :  { %v536_v17 = vrot.slane %v535_v35, 1  ;;  %v595_v38 = vrot.slane %v594_v8, 4  ;;  %v654_v61 = vrot.slane %v650_v45, %v1405_v47  ;;  %vm497_vm12 = vcmp.eq.f32.partialorder %v1767_v15, inf  ;;  %s1313_s29 = scalar_lea.vmem %s1208_s28, 32  ;;  %p1318_p9 = scmp.lt.s32.totalorder %s1208_s28, %s1208_s28 }
  0x95   :  { %v565_v37 = vmul.f32 0.0625, %v564_v7  ;;  %v606_v30 = vrot.slane %v605_v59, 2  ;;  %v720_v21 = vsub.s32 9, %v1824_v10  ;;  %v496_v27 = vmul.f32 %v1243_v24, %v1767_v15  ;;  %p1314_p8 = scmp.ne.s32.totalorder %s1208_s28, %s1313_s29  ;;  %p1319_p10 = scmp.lt.s32.totalorder %s1313_s29, %s1313_s29 }
  0x96   :  { %v700_v54 = vmul.f32 %v1814_v1, %v1814_v1  ;;  %v701_v46 = vmul.f32 %v1817_v60, %v1817_v60  ;;  %v764_v39 = vadd.f32 %v763_v23, %v762_v12  ;;  %1246 = vrcp.f32 %v430_v28  ;;  %v1859_v23 = vld [vmem:[#allocation2 + $0xb8] sm:$0xff] }
  0x97   :  { %vm499_vm13 = vcmp.eq.f32.partialorder %v1767_v15, 0.0  ;;  %v589_v50 = vadd.f32 %v588_v3, %v587_v40  ;;  %v634_v51 = vadd.f32 %v633_v18, %v632_v13  ;;  %v500_v31 = vand.u32 2147483648, %v1767_v15  ;;  %p1320_p11 = por %p1319_p10, %p1318_p9 }
  0x98   :  { %v596_v56 = vadd.f32 %v595_v38, %v594_v8  ;;  %vm655_vm14 = vcmp.lt.s32.totalorder %v1411_v57, %v654_v61  ;;  %vm656_vm15 = vcmp.lt.s32.totalorder %v1413_v58, %v654_v61  ;;  %v1836_v25 = vadd.f32 1e-06, %v565_v37 }
  0x99   :  { %v607_v22 = vadd.f32 %v606_v30, %v605_v59  ;;  %v657_v26 = vsel %vm655_vm14, %v1743_v62, 0.0  ;;  %v658_v55 = vsel %vm656_vm15, %v1746_v14, 0.0  ;;  %v498_v34 = vsel %vm497_vm12, %v1767_v15, %v496_v27  ;;  %p1321_p12 = pnand %p1320_p11, %p1314_p8 }
  0x9a   :  { %v702_v16 = vadd.f32 %v701_v46, %v700_v54  ;;  %v721_v42 = vmul.u32 %v720_v21, %v720_v21  ;;  %v765_v20 = vrot.slane %v764_v39, 2  ;;  %v470_v32 = vadd.f32 %v465_v63, %v1709_v5 }
  0x9b   :  { %v520_v2 = vrot.slane %v519_v33, 1  ;;  %v590_v29 = vrot.slane %v589_v50, 2  ;;  %v635_v52 = vrot.slane %v634_v51, 1  ;;  %v1245_v12 = vpop.eup %1244  ;;  %v527_v19 = vrot.slane %v526_v11, 1 }
  0x9c   :  { %v537_v40 = vadd.f32 %v536_v17, %v535_v35  ;;  %v597_v13 = vrot.slane %v596_v56, 2  ;;  %v659_v6 = vadd.f32 %v658_v55, %v657_v26  ;;  %v501_v0 = vsel %vm499_vm13, %v500_v31, %v498_v34  ;;  %v1857_v35 = vld [vmem:[#allocation2 + $0xb0] sm:$0xff] }
  0x9d   :  { %1248 = vrsqrt.f32 %v1836_v25  ;;  %v608_v8 = vrot.slane %v607_v22, 1  ;;  %v673_v45 = vsel %vm655_vm14, 1.0, %v1342_v9  ;;  %v674_v5 = vsel %vm656_vm15, 1.0, %v1342_v9 }
  0x9e   :  { %v703_v63 = vrot.slane %v702_v16, 4  ;;  %v722_v7 = vsub.s32 49, %v721_v42  ;;  %v766_v59 = vadd.f32 %v765_v20, %v764_v39  ;;  %v394_v15 = vmul.f32 %v1245_v12, %v1723_v4 }
  0x9f   :  { %v1862_v24 = vadd.f32 %v520_v2, %v519_v33  ;;  %v591_v28 = vadd.f32 %v590_v29, %v589_v50  ;;  %v636_v3 = vadd.f32 %v635_v52, %v634_v51  ;;  %v396_v18 = vmul.f32 %v1245_v12, %v1725_v43  ;;  %v1889_v2 = vld [vmem:[#allocation2 + $0xc8] sm:$0xff] }
  0xa0   :  { %v502_v17 = vadd.f32 1e-06, %v501_v0  ;;  %v542_v38 = vadd.f32 %v537_v40, %v470_v32  ;;  %v660_v37 = vrot.slane %v659_v6, 4  ;;  %v1247_v61 = vpop.eup %1246  ;;  %v1865_v30 = vadd.f32 %v597_v13, %v596_v56  ;;  %v1887_v32 = vld [vmem:[#allocation2 + $0xc0] sm:$0xff] }
  0xa1   :  { %v609_v21 = vadd.f32 %v608_v8, %v607_v22  ;;  %v675_v27 = vadd.f32 %v674_v5, %v673_v45  ;;  %v834_v54 = vadd.f32 %v1859_v23, %v1857_v35  ;;  %v1869_v46 = vadd.f32 %v527_v19, %v526_v11 }
  0xa2   :  { %v704_v4 = vadd.f32 %v703_v63, %v702_v16  ;;  %v726_v33 = vrot.slane %v722_v7, %v1405_v47  ;;  %v767_v39 = vrot.slane %v766_v59, 1  ;;  %v395_v50 = vadd.f32 %v394_v15, %v1765_v44 }
  0xa3   :  { %v592_v43 = vrot.slane %v591_v28, 1  ;;  %v637_v51 = vmul.f32 0.0625, %v636_v3  ;;  %v666_v31 = vadd.f32 %v1746_v14, %v1743_v62  ;;  %v397_v56 = vadd.f32 %v396_v18, %v1775_v36 }
  0xa4   :  { %v466_v22 = vmul.f32 %v1247_v61, %v1808_v49  ;;  %1250 = vrcp.f32 %v502_v17  ;;  %v661_v26 = vadd.f32 %v660_v37, %v659_v6  ;;  %v599_v11 = vrot.slane %v1865_v30, 1 }
  0xa5   :  { %v1878_v55 = vadd.f32 %v609_v21, %v542_v38  ;;  %v676_v34 = vrot.slane %v675_v27, 4  ;;  %v835_v16 = vrot.slane %v834_v54, 4  ;;  %v705_v42 = vrot.slane %v704_v4, 2 }
  0xa6   :  { %vm727_vm0 = vcmp.lt.s32.totalorder %v1411_v57, %v726_v33  ;;  %vm728_vm1 = vcmp.lt.s32.totalorder %v1413_v58, %v726_v33  ;;  %v768_v44 = vadd.f32 %v767_v39, %v766_v59  ;;  %v468_v62 = vmul.f32 %v1247_v61, %v1811_v41 }
  0xa7   :  { %v1249_v20 = vpop.eup %1248  ;;  %v1883_v14 = vadd.f32 %v592_v43, %v591_v28  ;;  %v1885_v36 = vadd.f32 1e-06, %v637_v51  ;;  %v667_v49 = vrot.slane %v666_v31, 4  ;;  %v467_v29 = vadd.f32 %v466_v22, %v395_v50 }
  0xa8   :  { %vm569_vm2 = vcmp.eq.f32.partialorder %v1836_v25, inf  ;;  %vm571_vm3 = vcmp.eq.f32.partialorder %v1836_v25, 0.0  ;;  %v662_v52 = vrot.slane %v661_v26, 2  ;;  %v677_v12 = vadd.f32 %v676_v34, %v675_v27 }
  0xa9   :  { %v745_v41 = vsel %vm727_vm0, 1.0, %v1342_v9  ;;  %v746_v19 = vsel %vm728_vm1, 1.0, %v1342_v9  ;;  %v836_v40 = vadd.f32 %v835_v16, %v834_v54  ;;  %v568_v13 = vmul.f32 %v1249_v20, %v1836_v25 }
  0xaa   :  { %v706_v6 = vadd.f32 %v705_v42, %v704_v4  ;;  %v769_v0 = vmul.f32 0.0625, %v768_v44  ;;  %v906_v8 = vadd.f32 %v1889_v2, %v1887_v32  ;;  %1252 = vrsqrt.f32 %v1885_v36 }
  0xab   :  { %v668_v45 = vadd.f32 %v667_v49, %v666_v31  ;;  %v792_v5 = vsub.s32 10, %v1824_v10  ;;  %v837_v63 = vrot.slane %v836_v40, 2  ;;  %v729_v7 = vsel %vm727_vm0, %v1814_v1, 0.0 }
  0xac   :  { %v730_v59 = vsel %vm728_vm1, %v1817_v60, 0.0  ;;  %v747_v15 = vadd.f32 %v746_v19, %v745_v41  ;;  %v907_v28 = vrot.slane %v906_v8, 4  ;;  %v572_v3 = vand.u32 2147483648, %v1836_v25 }
  0xad   :  { %v663_v18 = vadd.f32 %v662_v52, %v661_v26  ;;  %v678_v17 = vrot.slane %v677_v12, 2  ;;  %v838_v38 = vadd.f32 %v837_v63, %v836_v40  ;;  %v570_v61 = vsel %vm569_vm2, %v1836_v25, %v568_v13 }
  0xae   :  { %v1251_v37 = vpop.eup %1250  ;;  %v707_v21 = vrot.slane %v706_v6, 1  ;;  %v1915_v27 = vsub.f32 %v1790_v48, %v769_v0  ;;  %v1918_v54 = vsub.f32 %v1792_v53, %v769_v0  ;;  %v731_v4 = vadd.f32 %v730_v59, %v729_v7 }
  0xaf   :  { %v738_v33 = vadd.f32 %v1817_v60, %v1814_v1  ;;  %v793_v39 = vmul.u32 %v792_v5, %v792_v5  ;;  %v839_v50 = vrot.slane %v838_v38, 1  ;;  %v469_v43 = vadd.f32 %v468_v62, %v397_v56 }
  0xb0   :  { %v669_v51 = vrot.slane %v668_v45, 2  ;;  %v748_v31 = vrot.slane %v747_v15, 4  ;;  %v908_v22 = vadd.f32 %v907_v28, %v906_v8  ;;  %v538_v26 = vmul.f32 %v1251_v37, %v1862_v24 }
  0xb1   :  { %v540_v34 = vmul.f32 %v1251_v37, %v1869_v46  ;;  %v573_v48 = vsel %vm571_vm3, %v572_v3, %v570_v61  ;;  %v840_v16 = vadd.f32 %v839_v50, %v838_v38  ;;  %v679_v53 = vadd.f32 %v678_v17, %v677_v12  ;;  %v1956_v38 = vld [vmem:[#allocation2 + $0xd0] sm:$0xff] }
  0xb2   :  { %v708_v42 = vadd.f32 %v707_v21, %v706_v6  ;;  %v772_v44 = vmul.f32 %v1915_v27, %v1915_v27  ;;  %v773_v1 = vmul.f32 %v1918_v54, %v1918_v54  ;;  %v664_v60 = vrot.slane %v663_v18, 1 }
  0xb3   :  { %v732_v56 = vrot.slane %v731_v4, 4  ;;  %v739_v20 = vrot.slane %v738_v33, 4  ;;  %v794_v62 = vsub.s32 49, %v793_v39  ;;  %v574_v49 = vadd.f32 1e-06, %v573_v48 }
  0xb4   :  { %v749_v24 = vadd.f32 %v748_v31, %v747_v15  ;;  %v841_v52 = vmul.f32 0.0625, %v840_v16  ;;  %v909_v46 = vrot.slane %v908_v22, 2  ;;  %v1253_v41 = vpop.eup %1252  ;;  %v1930_v25 = vadd.f32 %v538_v26, %v467_v29 }
  0xb5   :  { %v1932_v19 = vadd.f32 %v540_v34, %v469_v43  ;;  %v1937_v12 = vadd.f32 %v599_v11, %v1865_v30  ;;  %v1939_v40 = vadd.f32 %v669_v51, %v668_v45  ;;  %v680_v13 = vrot.slane %v679_v53, 1 }
  0xb6   :  { %v709_v6 = vmul.f32 0.0625, %v708_v42  ;;  %v774_v0 = vadd.f32 %v773_v1, %v772_v44  ;;  %v910_v8 = vadd.f32 %v909_v46, %v908_v22  ;;  %v1941_v5 = vadd.f32 %v664_v60, %v663_v18 }
  0xb7   :  { %v733_v63 = vadd.f32 %v732_v56, %v731_v4  ;;  %v740_v7 = vadd.f32 %v739_v20, %v738_v33  ;;  %v798_v29 = vrot.slane %v794_v62, %v1405_v47  ;;  %1254 = vrcp.f32 %v574_v49 }
  0xb8   :  { %v750_v59 = vrot.slane %v749_v24, 2  ;;  %v1945_v15 = vsub.f32 %v1857_v35, %v841_v52  ;;  %v1948_v30 = vsub.f32 %v1859_v23, %v841_v52  ;;  %v640_v11 = vmul.f32 %v1253_v41, %v1885_v36  ;;  %v1958_v35 = vld [vmem:[#allocation2 + $0xd8] sm:$0xff] }
  0xb9   :  { %vm641_vm4 = vcmp.eq.f32.partialorder %v1885_v36, inf  ;;  %vm643_vm5 = vcmp.eq.f32.partialorder %v1885_v36, 0.0  ;;  %v644_v45 = vand.u32 2147483648, %v1885_v36  ;;  %v681_v28 = vadd.f32 %v680_v13, %v679_v53 }
  0xba   :  { %v1954_v3 = vadd.f32 1e-06, %v709_v6  ;;  %v775_v18 = vrot.slane %v774_v0, 4  ;;  %v911_v17 = vrot.slane %v910_v8, 1  ;;  %v734_v37 = vrot.slane %v733_v63, 2 }
  0xbb   :  { %v741_v23 = vrot.slane %v740_v7, 2  ;;  %vm799_vm6 = vcmp.lt.s32.totalorder %v1411_v57, %v798_v29  ;;  %v864_v61 = vsub.s32 11, %v1824_v10  ;;  %v751_v21 = vadd.f32 %v750_v59, %v749_v24 }
  0xbc   :  { %v844_v4 = vmul.f32 %v1945_v15, %v1945_v15  ;;  %v845_v33 = vmul.f32 %v1948_v30, %v1948_v30  ;;  %v912_v39 = vadd.f32 %v911_v17, %v910_v8  ;;  %v642_v50 = vsel %vm641_vm4, %v1885_v36, %v640_v11 }
  0xbd   :  { %vm800_vm7 = vcmp.lt.s32.totalorder %v1413_v58, %v798_v29  ;;  %v801_v43 = vsel %vm799_vm6, %v1915_v27, 0.0  ;;  %v978_v51 = vadd.f32 %v1958_v35, %v1956_v38  ;;  %1256 = vrsqrt.f32 %v1954_v3 }
  0xbe   :  { %v776_v31 = vadd.f32 %v775_v18, %v774_v0  ;;  %v802_v22 = vsel %vm800_vm7, %v1918_v54, 0.0  ;;  %v913_v26 = vmul.f32 0.0625, %v912_v39  ;;  %v671_v34 = vrot.slane %v1939_v40, 1 }
  0xbf   :  { %v742_v48 = vadd.f32 %v741_v23, %v740_v7  ;;  %v810_v16 = vadd.f32 %v1918_v54, %v1915_v27  ;;  %v865_v53 = vmul.u32 %v864_v61, %v864_v61  ;;  %v645_v42 = vsel %vm643_vm5, %v644_v45, %v642_v50 }
  0xc0   :  { %v735_v44 = vadd.f32 %v734_v37, %v733_v63  ;;  %v752_v1 = vrot.slane %v751_v21, 1  ;;  %v846_v60 = vadd.f32 %v845_v33, %v844_v4  ;;  %v803_v56 = vadd.f32 %v802_v22, %v801_v43  ;;  %v2023_v22 = vld [vmem:[#allocation2 + $0xe8] sm:$0xff] }
  0xc1   :  { %v817_v20 = vsel %vm799_vm6, 1.0, %v1342_v9  ;;  %v818_v62 = vsel %vm800_vm7, 1.0, %v1342_v9  ;;  %v979_v49 = vrot.slane %v978_v51, 4  ;;  %v1255_v24 = vpop.eup %1254  ;;  %v686_v27 = vadd.f32 %v681_v28, %v1878_v55 }
  0xc2   :  { %v777_v54 = vrot.slane %v776_v31, 2  ;;  %v1992_v36 = vsub.f32 %v1887_v32, %v913_v26  ;;  %v1995_v52 = vsub.f32 %v1889_v2, %v913_v26  ;;  %v646_v46 = vadd.f32 1e-06, %v645_v42 }
  0xc3   :  { %v743_v41 = vrot.slane %v742_v48, 1  ;;  %v811_v13 = vrot.slane %v810_v16, 4  ;;  %v866_v6 = vsub.s32 49, %v865_v53  ;;  %v736_v0 = vrot.slane %v735_v44, 1 }
  0xc4   :  { %v753_v8 = vadd.f32 %v752_v1, %v751_v21  ;;  %v819_v63 = vadd.f32 %v818_v62, %v817_v20  ;;  %v847_v7 = vrot.slane %v846_v60, 4  ;;  %v610_v29 = vmul.f32 %v1255_v24, %v1883_v14 }
  0xc5   :  { %v1999_v59 = vadd.f32 %v671_v34, %v1939_v40  ;;  %v804_v55 = vrot.slane %v803_v56, 4  ;;  %v980_v11 = vadd.f32 %v979_v49, %v978_v51  ;;  %v612_v32 = vmul.f32 %v1255_v24, %v1937_v12 }
  0xc6   :  { %v778_v45 = vadd.f32 %v777_v54, %v776_v31  ;;  %v916_v2 = vmul.f32 %v1992_v36, %v1992_v36  ;;  %v917_v28 = vmul.f32 %v1995_v52, %v1995_v52  ;;  %1258 = vrcp.f32 %v646_v46  ;;  %v2021_v31 = vld [vmem:[#allocation2 + $0xe0] sm:$0xff] }
  0xc7   :  { %v2006_v18 = vadd.f32 %v743_v41, %v742_v48  ;;  %v812_v17 = vadd.f32 %v811_v13, %v810_v16  ;;  %v870_v14 = vrot.slane %v866_v6, %v1405_v47  ;;  %v1257_v37 = vpop.eup %1256  ;;  %v2009_v40 = vadd.f32 %v736_v0, %v735_v44 }
  0xc8   :  { %v2011_v23 = vadd.f32 %v753_v8, %v686_v27  ;;  %v820_v61 = vrot.slane %v819_v63, 4  ;;  %v848_v12 = vadd.f32 %v847_v7, %v846_v60  ;;  %v2014_v21 = vadd.f32 %v610_v29, %v1930_v25 }
  0xc9   :  { %v805_v4 = vadd.f32 %v804_v55, %v803_v56  ;;  %v936_v33 = vsub.s32 12, %v1824_v10  ;;  %v981_v39 = vrot.slane %v980_v11, 2  ;;  %v2018_v50 = vadd.f32 %v612_v32, %v1932_v19 }
  0xca   :  { %vm713_vm8 = vcmp.eq.f32.partialorder %v1954_v3, inf  ;;  %v779_v43 = vrot.slane %v778_v45, 1  ;;  %v918_v51 = vadd.f32 %v917_v28, %v916_v2  ;;  %v712_v26 = vmul.f32 %v1257_v37, %v1954_v3 }
  0xcb   :  { %v813_v34 = vrot.slane %v812_v17, 2  ;;  %vm871_vm9 = vcmp.lt.s32.totalorder %v1411_v57, %v870_v14  ;;  %vm872_vm10 = vcmp.lt.s32.totalorder %v1413_v58, %v870_v14  ;;  %vm715_vm11 = vcmp.eq.f32.partialorder %v1954_v3, 0.0 }
  0xcc   :  { %v716_v25 = vand.u32 2147483648, %v1954_v3  ;;  %v821_v19 = vadd.f32 %v820_v61, %v819_v63  ;;  %v849_v48 = vrot.slane %v848_v12, 2  ;;  %v806_v16 = vrot.slane %v805_v4, 2 }
  0xcd   :  { %v937_v53 = vmul.u32 %v936_v33, %v936_v33  ;;  %v982_v42 = vadd.f32 %v981_v39, %v980_v11  ;;  %v1050_v44 = vadd.f32 %v2023_v22, %v2021_v31  ;;  %v780_v1 = vadd.f32 %v779_v43, %v778_v45 }
  0xce   :  { %v889_v60 = vsel %vm871_vm9, 1.0, %v1342_v9  ;;  %v890_v56 = vsel %vm872_vm10, 1.0, %v1342_v9  ;;  %v919_v20 = vrot.slane %v918_v51, 4  ;;  %v714_v62 = vsel %vm713_vm8, %v1954_v3, %v712_v26 }
  0xcf   :  { %v814_v49 = vadd.f32 %v813_v34, %v812_v17  ;;  %v983_v24 = vrot.slane %v982_v42, 1  ;;  %v1051_v27 = vrot.slane %v1050_v44, 4  ;;  %v822_v54 = vrot.slane %v821_v19, 2 }
  0xd0   :  { %v850_v46 = vadd.f32 %v849_v48, %v848_v12  ;;  %v873_v41 = vsel %vm871_vm9, %v1945_v15, 0.0  ;;  %v874_v13 = vsel %vm872_vm10, %v1948_v30, 0.0  ;;  %v1259_v6 = vpop.eup %1258  ;;  %v2047_v0 = vadd.f32 %v806_v16, %v805_v4 }
  0xd1   :  { %v891_v8 = vadd.f32 %v890_v56, %v889_v60  ;;  %v938_v63 = vsub.s32 49, %v937_v53  ;;  %v984_v7 = vadd.f32 %v983_v24, %v982_v42  ;;  %v717_v29 = vsel %vm715_vm11, %v716_v25, %v714_v62  ;;  %v2078_v60 = vld [vmem:[#allocation2 + $0xf0] sm:$0xff]  ;;  %v2080_v56 = vld [vmem:[#allocation2 + $0xf8] sm:$0xff] }
  0xd2   :  { %v781_v55 = vmul.f32 0.0625, %v780_v1  ;;  %v920_v11 = vadd.f32 %v919_v20, %v918_v51  ;;  %v1052_v32 = vadd.f32 %v1051_v27, %v1050_v44  ;;  %v815_v45 = vrot.slane %v814_v49, 1 }
  0xd3   :  { %v875_v2 = vadd.f32 %v874_v13, %v873_v41  ;;  %v882_v28 = vadd.f32 %v1948_v30, %v1945_v15  ;;  %v985_v17 = vmul.f32 0.0625, %v984_v7  ;;  %v682_v14 = vmul.f32 %v1259_v6, %v1941_v5 }
  0xd4   :  { %v684_v37 = vmul.f32 %v1259_v6, %v1999_v59  ;;  %v823_v61 = vadd.f32 %v822_v54, %v821_v19  ;;  %v851_v12 = vrot.slane %v850_v46, 1  ;;  %v718_v4 = vadd.f32 1e-06, %v717_v29 }
  0xd5   :  { %v892_v33 = vrot.slane %v891_v8, 4  ;;  %v2056_v3 = vsub.f32 %v1956_v38, %v985_v17  ;;  %v2059_v39 = vsub.f32 %v1958_v35, %v985_v17  ;;  %v2061_v43 = vadd.f32 1e-06, %v781_v55 }
  0xd6   :  { %v808_v51 = vrot.slane %v2047_v0, 1  ;;  %v921_v15 = vrot.slane %v920_v11, 2  ;;  %v1053_v30 = vrot.slane %v1052_v32, 2  ;;  %v876_v26 = vrot.slane %v875_v2, 4 }
  0xd7   :  { %v883_v5 = vrot.slane %v882_v28, 4  ;;  %v2065_v59 = vrot.slane %v938_v63, %v1405_v47  ;;  %v988_v34 = vmul.f32 %v2056_v3, %v2056_v3  ;;  %v2069_v25 = vadd.f32 %v815_v45, %v814_v49 }
  0xd8   :  { %v852_v38 = vadd.f32 %v851_v12, %v850_v46  ;;  %v989_v35 = vmul.f32 %v2059_v39, %v2059_v39  ;;  %v1008_v19 = vsub.s32 13, %v1824_v10  ;;  %v2075_v48 = vadd.f32 %v682_v14, %v2014_v21 }
  0xd9   :  { %1260 = vrcp.f32 %v718_v4  ;;  %v824_v16 = vrot.slane %v823_v61, 1  ;;  %v893_v53 = vadd.f32 %v892_v33, %v891_v8  ;;  %v922_v42 = vadd.f32 %v921_v15, %v920_v11 }
  0xda   :  { %1262 = vrsqrt.f32 %v2061_v43  ;;  %v990_v44 = vadd.f32 %v989_v35, %v988_v34  ;;  %v1054_v1 = vadd.f32 %v1053_v30, %v1052_v32  ;;  %v877_v20 = vadd.f32 %v876_v26, %v875_v2 }
  0xdb   :  { %v884_v62 = vadd.f32 %v883_v5, %v882_v28  ;;  %vm943_vm12 = vcmp.lt.s32.totalorder %v1411_v57, %v2065_v59  ;;  %vm944_vm13 = vcmp.lt.s32.totalorder %v1413_v58, %v2065_v59  ;;  %v853_v21 = vmul.f32 0.0625, %v852_v38 }
  0xdc   :  { %v991_v49 = vrot.slane %v990_v44, 4  ;;  %v1009_v24 = vmul.u32 %v1008_v19, %v1008_v19  ;;  %v1055_v27 = vrot.slane %v1054_v1, 1  ;;  %v2087_v54 = vadd.f32 %v684_v37, %v2018_v50 }
  0xdd   :  { %v894_v46 = vrot.slane %v893_v53, 2  ;;  %v1080_v41 = vsub.s32 14, %v1824_v10  ;;  %v1122_v13 = vadd.f32 %v2080_v56, %v2078_v60  ;;  %v825_v6 = vadd.f32 %v824_v16, %v823_v61 }
  0xde   :  { %v923_v8 = vrot.slane %v922_v42, 1  ;;  %v992_v63 = vadd.f32 %v991_v49, %v990_v44  ;;  %v1056_v7 = vadd.f32 %v1055_v27, %v1054_v1  ;;  %v878_v29 = vrot.slane %v877_v20, 2 }
  0xdf   :  { %v885_v55 = vrot.slane %v884_v62, 2  ;;  %v961_v11 = vsel %vm943_vm12, 1.0, %v1342_v9  ;;  %v962_v50 = vsel %vm944_vm13, 1.0, %v1342_v9  ;;  %v2100_v32 = vadd.f32 1e-06, %v853_v21 }
  0xe0   :  { %v993_v45 = vrot.slane %v992_v63, 2  ;;  %v1010_v2 = vsub.s32 49, %v1009_v24  ;;  %v1057_v28 = vmul.f32 0.0625, %v1056_v7  ;;  %v2103_v17 = vadd.f32 %v808_v51, %v2047_v0 }
  0xe1   :  { %v895_v14 = vadd.f32 %v894_v46, %v893_v53  ;;  %v1081_v37 = vmul.u32 %v1080_v41, %v1080_v41  ;;  %v1123_v61 = vrot.slane %v1122_v13, 4  ;;  %v924_v12 = vadd.f32 %v923_v8, %v922_v42 }
  0xe2   :  { %v994_v4 = vadd.f32 %v993_v45, %v992_v63  ;;  %v2106_v33 = vsub.f32 %v2021_v31, %v1057_v28  ;;  %v2109_v15 = vsub.f32 %v2023_v22, %v1057_v28  ;;  %v2112_v26 = vadd.f32 %v825_v6, %v2011_v23 }
  0xe3   :  { %v1261_v30 = vpop.eup %1260  ;;  %v2114_v5 = vadd.f32 %v878_v29, %v877_v20  ;;  %v2116_v34 = vadd.f32 %v885_v55, %v884_v62  ;;  %v963_v0 = vadd.f32 %v962_v50, %v961_v11  ;;  %vm785_vm14 = vcmp.eq.f32.partialorder %v2061_v43, inf }
  0xe4   :  { %v1263_v51 = vpop.eup %1262  ;;  %1264 = vrsqrt.f32 %v2100_v32  ;;  %v2121_v31 = vrot.slane %v1010_v2, %v1405_v47  ;;  %v1060_v22 = vmul.f32 %v2106_v33, %v2106_v33  ;;  %v1061_v23 = vmul.f32 %v2109_v15, %v2109_v15 }
  0xe5   :  { %v788_v38 = vand.u32 2147483648, %v2061_v43  ;;  %v995_v35 = vrot.slane %v994_v4, 1  ;;  %v1082_v19 = vsub.s32 49, %v1081_v37  ;;  %v1124_v16 = vadd.f32 %v1123_v61, %v1122_v13 }
  0xe6   :  { %v754_v53 = vmul.f32 %v1261_v30, %v2009_v40  ;;  %v896_v42 = vrot.slane %v895_v14, 1  ;;  %v925_v44 = vmul.f32 0.0625, %v924_v12  ;;  %v1062_v1 = vadd.f32 %v1061_v23, %v1060_v22 }
  0xe7   :  { %v756_v20 = vmul.f32 %v1261_v30, %v2006_v18  ;;  %v880_v62 = vrot.slane %v2114_v5, 1  ;;  %v945_v21 = vsel %vm943_vm12, %v1992_v36, 0.0  ;;  %v964_v49 = vrot.slane %v963_v0, 4 }
  0xe8   :  { %v784_v24 = vmul.f32 %v1263_v51, %v2061_v43  ;;  %v887_v27 = vrot.slane %v2116_v34, 1  ;;  %vm1015_vm15 = vcmp.lt.s32.totalorder %v1411_v57, %v2121_v31  ;;  %v1063_v40 = vrot.slane %v1062_v1, 4 }
  0xe9   :  { %v996_v46 = vadd.f32 %v995_v35, %v994_v4  ;;  %vm1016_vm0 = vcmp.lt.s32.totalorder %v1413_v58, %v2121_v31  ;;  %v2142_v18 = vrot.slane %v1082_v19, %v1405_v47  ;;  %v1125_v41 = vrot.slane %v1124_v16, 2 }
  0xea   :  { %v2145_v13 = vadd.f32 %v754_v53, %v2075_v48  ;;  %v2147_v6 = vadd.f32 %v896_v42, %v895_v14  ;;  %v2149_v8 = vadd.f32 1e-06, %v925_v44  ;;  %v1064_v63 = vadd.f32 %v1063_v40, %v1062_v1 }
  0xeb   :  { %v946_v7 = vsel %vm944_vm13, %v1995_v52, 0.0  ;;  %v965_v29 = vadd.f32 %v964_v49, %v963_v0  ;;  %v1126_v55 = vadd.f32 %v1125_v41, %v1124_v16  ;;  %v1152_v11 = vsub.s32 15, %v1824_v10 }
  0xec   :  { %v2157_v50 = vadd.f32 %v756_v20, %v2087_v54  ;;  %v954_v48 = vadd.f32 %v1995_v52, %v1992_v36  ;;  %v1033_v45 = vsel %vm1015_vm15, 1.0, %v1342_v9  ;;  %v1034_v59 = vsel %vm1016_vm0, 1.0, %v1342_v9 }
  0xed   :  { %v997_v2 = vmul.f32 0.0625, %v996_v46  ;;  %v1065_v28 = vrot.slane %v1064_v63, 2  ;;  %vm1087_vm1 = vcmp.lt.s32.totalorder %v1411_v57, %v2142_v18  ;;  %vm1088_vm2 = vcmp.lt.s32.totalorder %v1413_v58, %v2142_v18 }
  0xee   :  { %v1265_v10 = vpop.eup %1264  ;;  %vm787_vm3 = vcmp.eq.f32.partialorder %v2061_v43, 0.0  ;;  %1266 = vrsqrt.f32 %v2149_v8  ;;  %v947_v36 = vadd.f32 %v946_v7, %v945_v21  ;;  %v1127_v52 = vrot.slane %v1126_v55, 1 }
  0xef   :  { %v1153_v54 = vmul.u32 %v1152_v11, %v1152_v11  ;;  %v786_v14 = vsel %vm785_vm14, %v2061_v43, %v784_v24  ;;  %v966_v37 = vrot.slane %v965_v29, 2  ;;  %v1035_v61 = vadd.f32 %v1034_v59, %v1033_v45 }
  0xf0   :  { %v1066_v12 = vadd.f32 %v1065_v28, %v1064_v63  ;;  %v1105_v4 = vsel %vm1087_vm1, 1.0, %v1342_v9  ;;  %v1106_v30 = vsel %vm1088_vm2, 1.0, %v1342_v9  ;;  %v1128_v0 = vadd.f32 %v1127_v52, %v1126_v55 }
  0xf1   :  { %v1154_v51 = vsub.s32 49, %v1153_v54  ;;  %v856_v22 = vmul.f32 %v1265_v10, %v2100_v32  ;;  %v955_v23 = vrot.slane %v954_v48, 4  ;;  %v2187_v35 = vadd.f32 1e-06, %v997_v2 }
  0xf2   :  { %v1067_v19 = vrot.slane %v1066_v12, 1  ;;  %vm857_vm4 = vcmp.eq.f32.partialorder %v2100_v32, inf  ;;  %v948_v16 = vrot.slane %v947_v36, 4  ;;  %v1129_v53 = vmul.f32 0.0625, %v1128_v0 }
  0xf3   :  { %v2191_v42 = vrot.slane %v1154_v51, %v1405_v47  ;;  %vm859_vm5 = vcmp.eq.f32.partialorder %v2100_v32, 0.0  ;;  %v1036_v44 = vrot.slane %v1035_v61, 4  ;;  %v1107_v20 = vadd.f32 %v1106_v30, %v1105_v4 }
  0xf4   :  { %v1068_v1 = vadd.f32 %v1067_v19, %v1066_v12  ;;  %v860_v21 = vand.u32 2147483648, %v2100_v32  ;;  %v967_v49 = vadd.f32 %v966_v37, %v965_v29  ;;  %v2196_v24 = vsub.f32 %v2078_v60, %v1129_v53 }
  0xf5   :  { %v2199_v40 = vsub.f32 %v2080_v56, %v1129_v53  ;;  %v858_v46 = vsel %vm857_vm4, %v2100_v32, %v856_v22  ;;  %1268 = vrsqrt.f32 %v2187_v35  ;;  %vm1159_vm6 = vcmp.lt.s32.totalorder %v1411_v57, %v2191_v42 }
  0xf6   :  { %v1069_v47 = vmul.f32 0.0625, %v1068_v1  ;;  %v1017_v41 = vsel %vm1015_vm15, %v2056_v3, 0.0  ;;  %v1132_v60 = vmul.f32 %v2196_v24, %v2196_v24  ;;  %vm1160_vm7 = vcmp.lt.s32.totalorder %v1413_v58, %v2191_v42 }
  0xf7   :  { %v1133_v56 = vmul.f32 %v2199_v40, %v2199_v40  ;;  %v1018_v63 = vsel %vm1016_vm0, %v2059_v39, 0.0  ;;  %v1037_v7 = vadd.f32 %v1036_v44, %v1035_v61  ;;  %v1108_v55 = vrot.slane %v1107_v20, 4 }
  0xf8   :  { %v2219_v29 = vadd.f32 1e-06, %v1069_v47  ;;  %v1267_v11 = vpop.eup %1266  ;;  %v949_v45 = vadd.f32 %v948_v16, %v947_v36  ;;  %v1177_v2 = vsel %vm1159_vm6, 1.0, %v1342_v9  ;;  %v1178_v28 = vsel %vm1160_vm7, 1.0, %v1342_v9 }
  0xf9   :  { %v1134_v59 = vadd.f32 %v1133_v56, %v1132_v60  ;;  %v789_v31 = vsel %vm787_vm3, %v788_v38, %v786_v14  ;;  %v956_v10 = vadd.f32 %v955_v23, %v954_v48  ;;  %v968_v52 = vrot.slane %v967_v49, 1 }
  0xfa   :  { %1270 = vrsqrt.f32 %v2219_v29  ;;  %v861_v36 = vsel %vm859_vm5, %v860_v21, %v858_v46  ;;  %v902_v54 = vadd.f32 %v2147_v6, %v2112_v26  ;;  %v1019_v37 = vadd.f32 %v1018_v63, %v1017_v41 }
  0xfb   :  { %v1135_v61 = vrot.slane %v1134_v59, 4  ;;  %v928_v12 = vmul.f32 %v1267_v11, %v2149_v8  ;;  %v1038_v9 = vrot.slane %v1037_v7, 2  ;;  %v1109_v4 = vadd.f32 %v1108_v55, %v1107_v20 }
  0xfc   :  { %v1179_v30 = vadd.f32 %v1178_v28, %v1177_v2  ;;  %v790_v0 = vadd.f32 1e-06, %v789_v31  ;;  %vm929_vm8 = vcmp.eq.f32.partialorder %v2149_v8, inf  ;;  %v950_v43 = vrot.slane %v949_v45, 2 }
  0xfd   :  { %v1136_v38 = vadd.f32 %v1135_v61, %v1134_v59  ;;  %v957_v48 = vrot.slane %v956_v10, 2  ;;  %v969_v14 = vadd.f32 %v968_v52, %v967_v49  ;;  %v1026_v32 = vadd.f32 %v2059_v39, %v2056_v3 }
  0xfe   :  { %v1180_v51 = vrot.slane %v1179_v30, 4  ;;  %v862_v22 = vadd.f32 1e-06, %v861_v36  ;;  %vm931_vm9 = vcmp.eq.f32.partialorder %v2149_v8, 0.0  ;;  %v932_v26 = vand.u32 2147483648, %v2149_v8 }
  0xff   :  { %v1137_v6 = vrot.slane %v1136_v38, 2  ;;  %v1269_v23 = vpop.eup %1268  ;;  %v930_v19 = vsel %vm929_vm8, %v2149_v8, %v928_v12  ;;  %v1020_v16 = vrot.slane %v1019_v37, 4  ;;  %v1039_v53 = vadd.f32 %v1038_v9, %v1037_v7 }
 0x100   :  { %v1110_v44 = vrot.slane %v1109_v4, 2  ;;  %v1089_v1 = vsel %vm1087_vm1, %v2106_v33, 0.0  ;;  %v1090_v3 = vsel %vm1088_vm2, %v2109_v15, 0.0  ;;  %v1181_v20 = vadd.f32 %v1180_v51, %v1179_v30 }
 0x101   :  { %v1138_v39 = vadd.f32 %v1137_v6, %v1136_v38  ;;  %1272 = vrcp.f32 %v790_v0  ;;  %v2253_v21 = vadd.f32 %v950_v43, %v949_v45  ;;  %v2255_v49 = vadd.f32 %v957_v48, %v956_v10 }
 0x102   :  { %v1027_v46 = vrot.slane %v1026_v32, 4  ;;  %v933_v47 = vsel %vm931_vm9, %v932_v26, %v930_v19  ;;  %v974_v41 = vadd.f32 %v969_v14, %v902_v54  ;;  %v1000_v60 = vmul.f32 %v1269_v23, %v2187_v35 }
 0x103   :  { %v1139_v56 = vrot.slane %v1138_v39, 1  ;;  %vm1001_vm10 = vcmp.eq.f32.partialorder %v2187_v35, inf  ;;  %v1040_v18 = vrot.slane %v1039_v53, 1  ;;  %v1091_v7 = vadd.f32 %v1090_v3, %v1089_v1 }
 0x104   :  { %v1271_v63 = vpop.eup %1270  ;;  %v1111_v55 = vadd.f32 %v1110_v44, %v1109_v4  ;;  %1274 = vrcp.f32 %v862_v22  ;;  %v1021_v11 = vadd.f32 %v1020_v16, %v1019_v37  ;;  %v1182_v59 = vrot.slane %v1181_v20, 2 }
 0x105   :  { %v1140_v45 = vadd.f32 %v1139_v56, %v1138_v39  ;;  %v934_v2 = vadd.f32 1e-06, %v933_v47  ;;  %v1004_v28 = vand.u32 2147483648, %v2187_v35  ;;  %v1028_v31 = vadd.f32 %v1027_v46, %v1026_v32 }
 0x106   :  { %v1098_v8 = vadd.f32 %v2109_v15, %v2106_v33  ;;  %v1002_v10 = vsel %vm1001_vm10, %v2187_v35, %v1000_v60  ;;  %vm1003_vm11 = vcmp.eq.f32.partialorder %v2187_v35, 0.0  ;;  %v1072_v52 = vmul.f32 %v1271_v63, %v2219_v29 }
 0x107   :  { %v1141_v36 = vmul.f32 0.0625, %v1140_v45  ;;  %v1041_v54 = vadd.f32 %v1040_v18, %v1039_v53  ;;  %vm1073_vm12 = vcmp.eq.f32.partialorder %v2219_v29, inf  ;;  %v1092_v37 = vrot.slane %v1091_v7, 4 }
 0x108   :  { %v1112_v61 = vrot.slane %v1111_v55, 1  ;;  %v1161_v9 = vsel %vm1159_vm6, %v2196_v24, 0.0  ;;  %v1162_v33 = vsel %vm1160_vm7, %v2199_v40, 0.0  ;;  %v1183_v15 = vadd.f32 %v1182_v59, %v1181_v20 }
 0x109   :  { %v2268_v12 = vadd.f32 1e-06, %v1141_v36  ;;  %v1005_v35 = vsel %vm1003_vm11, %v1004_v28, %v1002_v10  ;;  %v1022_v4 = vrot.slane %v1021_v11, 2  ;;  %v1076_v30 = vand.u32 2147483648, %v2219_v29 }
 0x10a   :  { %v1099_v0 = vrot.slane %v1098_v8, 4  ;;  %1276 = vrcp.f32 %v934_v2  ;;  %v1029_v43 = vrot.slane %v1028_v31, 2  ;;  %v1074_v38 = vsel %vm1073_vm12, %v2219_v29, %v1072_v52 }
 0x10b   :  { %vm1075_vm13 = vcmp.eq.f32.partialorder %v2219_v29, 0.0  ;;  %v1273_v48 = vpop.eup %1272  ;;  %v1093_v57 = vadd.f32 %v1092_v37, %v1091_v7  ;;  %1278 = vrsqrt.f32 %v2268_v12  ;;  %v1163_v14 = vadd.f32 %v1162_v33, %v1161_v9 }
 0x10c   :  { %v1170_v58 = vadd.f32 %v2199_v40, %v2196_v24  ;;  %v1006_v42 = vadd.f32 1e-06, %v1005_v35  ;;  %v1046_v32 = vadd.f32 %v1041_v54, %v974_v41  ;;  %v1113_v51 = vadd.f32 %v1112_v61, %v1111_v55 }
 0x10d   :  { %v1184_v22 = vrot.slane %v1183_v15, 1  ;;  %v881_v26 = vadd.f32 %v880_v62, %v2114_v5  ;;  %v952_v6 = vrot.slane %v2253_v21, 1  ;;  %v1077_v23 = vsel %vm1075_vm13, %v1076_v30, %v1074_v38 }
 0x10e   :  { %v1100_v29 = vadd.f32 %v1099_v0, %v1098_v8  ;;  %v1275_v19 = vpop.eup %1274  ;;  %v826_v16 = vmul.f32 %v1273_v48, %v2103_v17  ;;  %v828_v53 = vmul.f32 %v1273_v48, %v2069_v25  ;;  %v959_v44 = vrot.slane %v2255_v49, 1 }
 0x10f   :  { %v1023_v24 = vadd.f32 %v1022_v4, %v1021_v11  ;;  %v1030_v40 = vadd.f32 %v1029_v43, %v1028_v31  ;;  %v1094_v1 = vrot.slane %v1093_v57, 2  ;;  %v1164_v3 = vrot.slane %v1163_v14, 4 }
 0x110   :  { %v1171_v39 = vrot.slane %v1170_v58, 4  ;;  %1280 = vrcp.f32 %v1006_v42  ;;  %v1078_v20 = vadd.f32 1e-06, %v1077_v23  ;;  %v1118_v46 = vadd.f32 %v1113_v51, %v1046_v32 }
 0x111   :  { %v1185_v5 = vadd.f32 %v1184_v22, %v1183_v15  ;;  %v888_v62 = vadd.f32 %v887_v27, %v2116_v34  ;;  %v1101_v47 = vrot.slane %v1100_v29, 2  ;;  %v827_v17 = vadd.f32 %v826_v16, %v2145_v13 }
 0x112   :  { %v953_v25 = vadd.f32 %v952_v6, %v2253_v21  ;;  %v960_v41 = vadd.f32 %v959_v44, %v2255_v49  ;;  %v1024_v60 = vrot.slane %v1023_v24, 1  ;;  %v898_v56 = vmul.f32 %v1275_v19, %v881_v26 }
 0x113   :  { %v1031_v63 = vrot.slane %v1030_v40, 1  ;;  %v1165_v18 = vadd.f32 %v1164_v3, %v1163_v14  ;;  %v1172_v7 = vadd.f32 %v1171_v39, %v1170_v58  ;;  %v829_v11 = vadd.f32 %v828_v53, %v2157_v50 }
 0x114   :  { %v1277_v55 = vpop.eup %1276  ;;  %1282 = vrcp.f32 %v1078_v20  ;;  %v1095_v45 = vadd.f32 %v1094_v1, %v1093_v57  ;;  %v1190_v59 = vadd.f32 %v1185_v5, %v1118_v46  ;;  %v900_v34 = vmul.f32 %v1275_v19, %v888_v62 }
 0x115   :  { %v1279_v2 = vpop.eup %1278  ;;  %v1102_v27 = vadd.f32 %v1101_v47, %v1100_v29  ;;  %vm1145_vm14 = vcmp.eq.f32.partialorder %v2268_v12, inf  ;;  %v1148_v13 = vand.u32 2147483648, %v2268_v12  ;;  %v1025_v21 = vadd.f32 %v1024_v60, %v1023_v24 }
 0x116   :  { %v1144_v49 = vmul.f32 %v1279_v2, %v2268_v12  ;;  %vm1147_vm15 = vcmp.eq.f32.partialorder %v2268_v12, 0.0  ;;  %v899_v28 = vadd.f32 %v898_v56, %v827_v17  ;;  %v1032_v31 = vadd.f32 %v1031_v63, %v1030_v40 }
 0x117   :  { %v1166_v8 = vrot.slane %v1165_v18, 2  ;;  %v1173_v10 = vrot.slane %v1172_v7, 2  ;;  %v970_v50 = vmul.f32 %v1277_v55, %v953_v25  ;;  %v1096_v52 = vrot.slane %v1095_v45, 1 }
 0x118   :  { %v1146_v36 = vsel %vm1145_vm14, %v2268_v12, %v1144_v49  ;;  %v1191_v54 = vsub.f32 256.0, %v1190_v59  ;;  %v901_v37 = vadd.f32 %v900_v34, %v829_v11  ;;  %v972_v61 = vmul.f32 %v1277_v55, %v960_v41 }
 0x119   :  { %v1103_v9 = vrot.slane %v1102_v27, 1  ;;  %v1149_v33 = vsel %vm1147_vm15, %v1148_v13, %v1146_v36  ;;  %v1192_v4 = vadd.f32 1e-06, %v1190_v59  ;;  %v1167_v30 = vadd.f32 %v1166_v8, %v1165_v18 }
 0x11a   :  { %v1281_v15 = vpop.eup %1280  ;;  %v1150_v35 = vadd.f32 1e-06, %v1149_v33  ;;  %v1174_v0 = vadd.f32 %v1173_v10, %v1172_v7  ;;  %v971_v43 = vadd.f32 %v970_v50, %v899_v28  ;;  %v1097_v38 = vadd.f32 %v1096_v52, %v1095_v45 }
 0x11b   :  { %v1196_v48 = vadd.f32 1e-06, %v1191_v54  ;;  %v973_v57 = vadd.f32 %v972_v61, %v901_v37  ;;  %v1042_v14 = vmul.f32 %v1281_v15, %v1025_v21  ;;  %v1044_v58 = vmul.f32 %v1281_v15, %v1032_v31 }
 0x11c   :  { %1284 = vrcp.f32 %v1150_v35  ;;  %v1104_v42 = vadd.f32 %v1103_v9, %v1102_v27  ;;  %v1168_v12 = vrot.slane %v1167_v30, 1  ;;  %v1175_v51 = vrot.slane %v1174_v0, 1 }
 0x11d   :  { %1286 = vrcp.f32 %v1192_v4  ;;  %v1043_v22 = vadd.f32 %v1042_v14, %v971_v43  ;;  %v1045_v26 = vadd.f32 %v1044_v58, %v973_v57 }
 0x11e   :  { %v1283_v32 = vpop.eup %1282  ;;  %1288 = vrcp.f32 %v1196_v48  ;;  %v1169_v29 = vadd.f32 %v1168_v12, %v1167_v30  ;;  %v1176_v19 = vadd.f32 %v1175_v51, %v1174_v0 }
 0x11f   :  { %v1114_v6 = vmul.f32 %v1283_v32, %v1097_v38  ;;  %v1116_v23 = vmul.f32 %v1283_v32, %v1104_v42 }
 0x121   :  { %v1115_v16 = vadd.f32 %v1114_v6, %v1043_v22  ;;  %v1117_v53 = vadd.f32 %v1116_v23, %v1045_v26 }
 0x126   :  { %v1285_v44 = vpop.eup %1284 }
 0x127   :  { %v1186_v24 = vmul.f32 %v1285_v44, %v1169_v29  ;;  %v1188_v40 = vmul.f32 %v1285_v44, %v1176_v19  ;;  %v1287_v1 = vpop.eup %1286 }
 0x128   :  { %v1289_v20 = vpop.eup %1288 }
 0x129   :  { %v1187_v3 = vadd.f32 %v1186_v24, %v1115_v16  ;;  %v1189_v39 = vadd.f32 %v1188_v40, %v1117_v53 }
 0x12b   :  { %v1194_v46 = vmul.f32 %v1287_v1, %v1187_v3  ;;  %v1195_v5 = vsub.f32 %v1189_v39, %v1187_v3 }
 0x12d   :  { %v1198_v62 = vmul.f32 %v1289_v20, %v1195_v5  ;;  %1199 = vst [vmem:[#allocation5] sm:$0x1] %v1194_v46 }
 0x12f   :  { %1200 = vst [vmem:[#allocation5 + $0x1] sm:$0x1] %v1198_v62 }
 0x130   :  { %1324 = shalt.err (!%p1321_p12)
}
 0x131   :  { %s1325_s4 = scalar_lea.hbm %s2317_s2, 32 }
 0x132   :  { %p1326_p13 = scmp.ne.s32.totalorder %s2317_s2, %s1325_s4  ;;  %p1329_p0 = scmp.lt.u32.totalorder %s1325_s4, %s2317_s2 }
 0x134   :  { %p1331_p1 = pnand %p1329_p0, %p1326_p13 }
 0x136   :  { %1334 = shalt.err (!%p1331_p1)
}
 0x137   :  { %1210 = dma.vmem_to_hbm [thread:$0]  %s1208_s28, 32, %s2317_s2, [#allocation4]  }
 0x138   :  { %1337 = dma.done.wait [#allocation4], 32  }
 0x139   :  { %1338 = vsyncadd [#allocation4], 4294967264 }
 0x13a   :  { %1214 = vsyncpa [#allocation3], 1 }
 0x13b   :  { %1215 = vsyncpa [#allocation4], 1 }

</bundles_post_ra>
